<compile_context>
chip_gen: v6e
topology: v6e:2x2x1
jax: 0.10.0
libtpu: 0.0.40
codegen_flags: <defaults>
</compile_context>

<pallas_src>
import functools

import jax
import jax.numpy as jnp
import numpy as np
from jax import lax
from jax.experimental import pallas as pl
from jax.experimental.pallas import tpu as pltpu

EPS = 1e-5  # PyTorch GroupNorm default eps


def _activation(x):
    """torch.where((x>=-3)&(x<=3), Hardswish(x), clamp(x,0,6) + 0.01*clamp(x,max=0))."""
    hswish = x * jnp.clip(x + 3.0, 0.0, 6.0) * (1.0 / 6.0)
    other = jnp.clip(x, 0.0, 6.0) + 0.01 * jnp.minimum(x, 0.0)
    return jnp.where((x >= -3.0) & (x <= 3.0), hswish, other)


def _hardsigmoid(x):
    return jnp.clip(x + 3.0, 0.0, 6.0) * (1.0 / 6.0)


def _branch_kernel(x_ref, w_dw_ref, pcol_ref, w12_ref, vmask_ref, out_ref, y2d_ref, *,
                   branch_taps, C, Ho, Wo, Wh, num_groups, se_hidden, matmul_bf16):
    P = Ho * Wo          # number of valid output pixels for this sample
    W2 = Ho * Wh         # working lane width (valid pixels + inter-row junk lanes)
    b = pl.program_id(1)

    # ---- layer3: dilated depthwise conv, branch-specific *static* tap windows ----
    # x_ref layout (per sample): (s*s phases, C, Hh2*Wh).  Each tap is one big
    # contiguous (C, W2) slice of the flattened phase image, so the tap FMA runs
    # lane-dense and the scratch store below is a single unmasked full store.
    for bi, taps in enumerate(branch_taps):
        @pl.when(b == bi)
        def _(taps=taps):
            acc = jnp.zeros((C, W2), jnp.float32)
            for t, (ph, qr, qc) in enumerate(taps):
                start = qr * Wh + qc
                acc = acc + x_ref[ph, :, start:start + W2] * w_dw_ref[t]  # (C,1) bcast
            y2d_ref[...] = acc

    # packed per-channel params: [b_dw, b_1x1, gamma, beta, w_sse, fc1^T cols, fc2 cols]
    b_dw = pcol_ref[:, 0:1]
    b_12 = pcol_ref[:, 1:2]
    gamma = pcol_ref[:, 2:3]
    beta = pcol_ref[:, 3:4]
    w_sse = pcol_ref[:, 4:5]
    w_fc1t = pcol_ref[:, 5:5 + se_hidden]                 # (C, R)
    w_fc2 = pcol_ref[:, 5 + se_hidden:5 + 2 * se_hidden]  # (C, R)
    vmask = vmask_ref[...]                                # (1, W2) 0/1 valid-lane mask

    y = _activation(y2d_ref[...] + b_dw)                  # (C, W2)

    # ---- layer2: 1x1 conv == channel matmul on the MXU (columns independent,
    # so junk lanes stay junk and never contaminate valid lanes). ----
    w12 = w12_ref[...]
    if matmul_bf16:
        z = jnp.dot(w12.astype(jnp.bfloat16), y.astype(jnp.bfloat16),
                    preferred_element_type=jnp.float32) + b_12
    else:
        z = jnp.dot(w12, y, preferred_element_type=jnp.float32) + b_12

    # ---- GroupNorm(num_groups, C): vectorized two-pass stats.  Two masked
    # (C, W2) passes + tiny per-group combines on (C, 1) columns. ----
    gsize = C // num_groups
    cnt = float(gsize * P)
    chan = lax.broadcasted_iota(jnp.int32, (C, 1), 0)

    rs = jnp.sum(z * vmask, axis=1, keepdims=True)        # (C, 1) per-channel sums
    mean_c = jnp.zeros((C, 1), jnp.float32)
    for g in range(num_groups):
        m = (chan >= g * gsize) & (chan < (g + 1) * gsize)
        mu = jnp.sum(jnp.where(m, rs, 0.0)) / cnt
        mean_c = mean_c + jnp.where(m, mu, 0.0)

    d = (z - mean_c) * vmask
    rs2 = jnp.sum(d * d, axis=1, keepdims=True)            # (C, 1) centered squares
    rstd_c = jnp.zeros((C, 1), jnp.float32)
    for g in range(num_groups):
        m = (chan >= g * gsize) & (chan < (g + 1) * gsize)
        var = jnp.sum(jnp.where(m, rs2, 0.0)) / cnt
        rstd_c = rstd_c + jnp.where(m, lax.rsqrt(var + EPS), 0.0)

    z = (z - mean_c) * rstd_c * gamma + beta
    z = _activation(z)

    # channel_shuffle(groups=3) is folded into wrapper-side weight/output perms.

    # ---- scSE: sSE spatial gate + cSE channel gate, summed ----
    q = jax.nn.sigmoid(jnp.sum(z * w_sse, axis=0, keepdims=True))          # (1, W2)

    pooled = jnp.sum(z * vmask, axis=1, keepdims=True) * (1.0 / P)          # (C, 1)
    h = jnp.maximum(jnp.sum(w_fc1t * pooled, axis=0, keepdims=True), 0.0)   # (1, R)
    s_col = _hardsigmoid(jnp.sum(w_fc2 * h, axis=1, keepdims=True))         # (C, 1)

    out_ref[...] = (z * (s_col + q)).astype(out_ref.dtype)  # full-lane unmasked store


def basic_block_downsample_down_forward(x, params, *, kernels, strides, paddings,
                                         dilations, num_groups=3, shuffle_groups=3,
                                         se_reduction=3, matmul_bf16=None):
    """x: (N, C, H, W) float32 NCHW; params: list of 3 per-branch dicts."""
    N, C, H, W = x.shape
    B = len(params)
    assert C % num_groups == 0 and C % se_reduction == 0
    s = strides[0]
    assert all(si == s for si in strides), "branches must share a stride"
    sizes = []
    for k, p, d in zip(kernels, paddings, dilations):
        ho = (H + 2 * p - d * (k - 1) - 1) // s + 1
        wo = (W + 2 * p - d * (k - 1) - 1) // s + 1
        sizes.append((ho, wo))
    Ho, Wo = sizes[0]
    assert all(sz == (Ho, Wo) for sz in sizes), "branch outputs must match for concat"
    R = C // se_reduction
    if matmul_bf16 is None:
        matmul_bf16 = C >= 128   # only worth MXU-feeding bf16 at non-toy channel counts

    # Pad once to the max padding, round H/W up to a multiple of the stride (+ one
    # extra phase row so every tap's flattened window stays in bounds), and split
    # into stride phases with the per-phase image flattened to one lane axis.
    # HBM traffic stays ~1x the input (no K*K im2col blow-up).
    pmax = max(paddings)
    Hp, Wp = H + 2 * pmax, W + 2 * pmax
    Hp_r, Wp_r = -(-Hp // s) * s, -(-Wp // s) * s
    x_pad = jnp.pad(x.astype(jnp.float32),
                    ((0, 0), (0, 0),
                     (pmax, pmax + (Hp_r - Hp) + s),     # +s rows -> one extra phase row
                     (pmax, pmax + Wp_r - Wp)))
    Hh, Wh = Hp_r // s, Wp_r // s
    Hh2 = Hh + 1
    L = Hh2 * Wh
    W2 = Ho * Wh
    xr = x_pad.reshape(N, C, Hh2, s, Wh, s)               # (N, C, qh, rh, qw, rw)
    x_ph = jnp.transpose(xr, (3, 5, 0, 1, 2, 4)).reshape(s * s, N, C, L)

    # Static per-(branch, tap) metadata: (phase id, row start, col start) in phase coords.
    branch_taps = []
    for k, p, d in zip(kernels, paddings, dilations):
        taps = []
        for ki in range(k):
            for kj in range(k):
                off_r = (pmax - p) + d * ki
                off_c = (pmax - p) + d * kj
                taps.append(((off_r % s) * s + (off_c % s), off_r // s, off_c // s))
        branch_taps.append(tuple(taps))
    branch_taps = tuple(branch_taps)
    KK = max(len(t) for t in branch_taps)

    # channel_shuffle is a fixed channel permutation: fold it into the SE weights
    # and undo it on the output instead of permuting data in-kernel.
    if C % shuffle_groups == 0:
        perm = np.arange(C).reshape(shuffle_groups, C // shuffle_groups).T.reshape(-1)
    else:
        perm = np.arange(C)
    invperm = np.argsort(perm)

    wdw_list, pcol_list, w12_list = [], [], []
    for bi, pr in enumerate(params):
        k = kernels[bi]
        assert pr["w_dw"].shape == (C, 1, k, k), "layer3 must be depthwise (C_in == C_out)"
        wd = pr["w_dw"].reshape(C, k * k).T                  # (k*k, C), tap-leading
        wd = jnp.pad(wd, ((0, KK - k * k), (0, 0)))[:, :, None]
        wdw_list.append(wd)
        small = [pr["b_dw"].reshape(C), pr["b_1x1"].reshape(C),
                 pr["gn_w"].reshape(C), pr["gn_b"].reshape(C),
                 pr["w_sse"].reshape(C)[invperm]]
        pc = jnp.stack(small, axis=1)                        # (C, 5)
        w1t = pr["w_fc1"][:, invperm].T                      # (C, R)
        w2p = pr["w_fc2"][invperm, :]                        # (C, R)
        pcol_list.append(jnp.concatenate([pc, w1t, w2p], axis=1))
        w12_list.append(pr["w_1x1"].reshape(C, C))
    w_dw = jnp.stack(wdw_list).astype(jnp.float32)           # (B, KK, C, 1)
    pcol = jnp.stack(pcol_list).astype(jnp.float32)          # (B, C, 5 + 2R)
    w12 = jnp.stack(w12_list).astype(jnp.float32)            # (B, C, C)

    # 0/1 mask of valid lanes (col % Wh < Wo), precomputed so the kernel needs no
    # non-power-of-two integer division.
    cols = np.arange(W2)
    vmask = jnp.asarray(((cols % Wh) < Wo).astype(np.float32)).reshape(1, W2)

    kernel = functools.partial(_branch_kernel, branch_taps=branch_taps, C=C, Ho=Ho,
                               Wo=Wo, Wh=Wh, num_groups=num_groups, se_hidden=R,
                               matmul_bf16=matmul_bf16)

    # Explicit VMEM budget: 2x double-buffered blocks + scratch + headroom.
    f32b = 4
    blk_bytes = (s * s * C * L + KK * C + C * (5 + 2 * R) + C * C + W2 + C * W2) * f32b
    vmem_limit = int(min(100 * 2 ** 20,
                         max(32 * 2 ** 20, 2 * blk_bytes + C * W2 * f32b + (4 << 20))))

    total_taps = sum(len(t) for t in branch_taps)
    cost = pl.CostEstimate(
        flops=int(N * B * 2 * C * C * W2 + N * 2 * C * W2 * total_taps
                  + N * B * 60 * C * W2),
        transcendentals=int(N * B * (2 * C * W2 + W2 + C)),
        bytes_accessed=int(4 * (x_ph.size + w_dw.size + pcol.size + w12.size
                                + vmask.size + B * N * C * W2)))

    out = pl.pallas_call(
        kernel,
        out_shape=jax.ShapeDtypeStruct((B, N, C, W2), jnp.float32),
        grid=(N, B),   # branch fastest -> per-sample input block DMA'd once per sample
        in_specs=[
            pl.BlockSpec((s * s, None, C, L), lambda n, b: (0, n, 0, 0)),   # x phases
            pl.BlockSpec((None, KK, C, 1), lambda n, b: (b, 0, 0, 0)),      # dw weights
            pl.BlockSpec((None, C, 5 + 2 * R), lambda n, b: (b, 0, 0)),     # packed vecs
            pl.BlockSpec((None, C, C), lambda n, b: (b, 0, 0)),             # 1x1 weights
            pl.BlockSpec((1, W2), lambda n, b: (0, 0)),                     # valid mask
        ],
        out_specs=pl.BlockSpec((None, None, C, W2), lambda n, b: (b, n, 0, 0)),
        scratch_shapes=[pltpu.VMEM((C, W2), jnp.float32)],
        compiler_params=pltpu.CompilerParams(
            dimension_semantics=("parallel", "parallel"),
            vmem_limit_bytes=vmem_limit),
        cost_estimate=cost,
    )(x_ph, w_dw, pcol, w12, vmask)

    # Drop junk lanes, undo the folded channel shuffle, interleave branches on channels.
    out = out.reshape(B, N, C, Ho, Wh)[..., :Wo]
    out = out[:, :, perm]
    out = jnp.transpose(out, (1, 0, 2, 3, 4)).reshape(N, B * C, Ho, Wo)
    return out


# ----------------------------- pure-JAX reference -----------------------------
def _channel_shuffle(x, groups=3):
    n, c, h, w = x.shape
    if c % groups:
        return x
    return x.reshape(n, groups, c // groups, h, w).transpose(0, 2, 1, 3, 4).reshape(n, c, h, w)


def reference_forward(x, params, *, kernels, strides, paddings, dilations,
                      num_groups=3, se_reduction=3):
    N, C, H, W = x.shape
    hp = jax.lax.Precision.HIGHEST
    outs = []
    for pr, k, s, p, d in zip(params, kernels, strides, paddings, dilations):
        y = lax.conv_general_dilated(
            x, pr["w_dw"], window_strides=(s, s), padding=[(p, p), (p, p)],
            rhs_dilation=(d, d), dimension_numbers=("NCHW", "OIHW", "NCHW"),
            feature_group_count=C, precision=hp)
        y = _activation(y + pr["b_dw"][None, :, None, None])
        z = jnp.einsum("oc,nchw->nohw", pr["w_1x1"].reshape(C, C), y, precision=hp)
        z = z + pr["b_1x1"][None, :, None, None]
        n_, c_, h_, w_ = z.shape
        zr = z.reshape(n_, num_groups, -1)
        mean = zr.mean(axis=-1, keepdims=True)
        var = zr.var(axis=-1, keepdims=True)
        z = ((zr - mean) / jnp.sqrt(var + EPS)).reshape(n_, c_, h_, w_)
        z = z * pr["gn_w"][None, :, None, None] + pr["gn_b"][None, :, None, None]
        z = _activation(z)
        z = _channel_shuffle(z, 3)
        q = jax.nn.sigmoid(jnp.einsum("c,nchw->nhw", pr["w_sse"].reshape(C), z,
                                      precision=hp))[:, None]
        pooled = z.mean(axis=(2, 3))                          # (N, C)
        hmid = jnp.maximum(pooled @ pr["w_fc1"].T, 0.0)       # (N, R)
        sc = _hardsigmoid(hmid @ pr["w_fc2"].T)               # (N, C)
        outs.append(z * sc[:, :, None, None] + z * q)
    return jnp.concatenate(outs, axis=1)


if __name__ == "__main__":
    # GroupNorm(3, C) / channel_shuffle(3) / SE reduction 3 -> C % 3 == 0.
    N, C, H, W = 2, 6, 16, 16
    kernels = (3, 3, 3)
    strides = (2, 2, 2)
    paddings = (3, 2, 1)
    dilations = (3, 2, 1)          # as in BasicBlock_downsample_down (d1, d2, d3)
    R = C // 3

    key = jax.random.PRNGKey(0)
    keys = jax.random.split(key, 1 + 9 * 3)
    x = jax.random.normal(keys[0], (N, C, H, W), jnp.float32)

    params = []
    idx = 1
    for bi in range(3):
        k = kernels[bi]
        params.append({
            "w_dw": jax.random.normal(keys[idx + 0], (C, 1, k, k), jnp.float32) * 0.3,
            "b_dw": jax.random.normal(keys[idx + 1], (C,), jnp.float32) * 0.1,
            "w_1x1": jax.random.normal(keys[idx + 2], (C, C, 1, 1), jnp.float32) * 0.3,
            "b_1x1": jax.random.normal(keys[idx + 3], (C,), jnp.float32) * 0.1,
            "gn_w": 1.0 + 0.1 * jax.random.normal(keys[idx + 4], (C,), jnp.float32),
            "gn_b": 0.1 * jax.random.normal(keys[idx + 5], (C,), jnp.float32),
            "w_sse": jax.random.normal(keys[idx + 6], (1, C, 1, 1), jnp.float32) * 0.3,
            "w_fc1": jax.random.normal(keys[idx + 7], (R, C), jnp.float32) * 0.3,
            "w_fc2": jax.random.normal(keys[idx + 8], (C, R), jnp.float32) * 0.3,
        })
        idx += 9

    out = basic_block_downsample_down_forward(
        x, params, kernels=kernels, strides=strides, paddings=paddings,
        dilations=dilations)
    out = jax.block_until_ready(out)

    ref = reference_forward(x, params, kernels=kernels, strides=strides,
                            paddings=paddings, dilations=dilations)
    assert out.shape == (N, 3 * C, H // 2, W // 2), out.shape
    err = float(jnp.max(jnp.abs(out - ref)))
    assert err < 1e-2, f"max abs err = {err}"
    print("KERNEL_OK")
</pallas_src>

<mosaic_0001>
module attributes {stable_mosaic.version = 11 : i64} {
  func.func @_branch_kernel(%arg0: i32, %arg1: i32, %arg2: memref<4x1x6x132xf32, #tpu.memory_space<vmem>>, %arg3: memref<1x9x6x1xf32, #tpu.memory_space<vmem>>, %arg4: memref<1x6x9xf32, #tpu.memory_space<vmem>>, %arg5: memref<1x6x6xf32, #tpu.memory_space<vmem>>, %arg6: memref<1x88xf32, #tpu.memory_space<vmem>>, %arg7: memref<1x1x6x88xf32, #tpu.memory_space<vmem>>, %arg8: memref<6x88xf32, #tpu.memory_space<vmem>>) attributes {dimension_semantics = [#tpu.dimension_semantics<parallel>, #tpu.dimension_semantics<parallel>], iteration_bounds = array<i64: 2, 3>, scalar_prefetch = 0 : i64, scratch_operands = 1 : i64, tpu.core_type = #tpu.core_type<tc>, window_params = [{transform_indices = @transform_0, window_bounds = array<i64: 4, 1, 6, 132>}, {transform_indices = @transform_1, window_bounds = array<i64: 1, 9, 6, 1>}, {transform_indices = @transform_2, window_bounds = array<i64: 1, 6, 9>}, {transform_indices = @transform_3, window_bounds = array<i64: 1, 6, 6>}, {pipeline_mode = #tpu.pipeline_mode<synchronous>, transform_indices = @transform_4, window_bounds = array<i64: 1, 88>}, {transform_indices = @transform_5, window_bounds = array<i64: 1, 1, 6, 88>}]} {
    %c0_i32 = arith.constant 0 : i32
    %0 = arith.cmpi eq, %arg1, %c0_i32 : i32
    %1 = arith.extui %0 : i1 to i32
    %c0_i32_0 = arith.constant 0 : i32
    %2 = arith.cmpi ne, %1, %c0_i32_0 : i32
    scf.if %2 {
      %cst_100 = arith.constant 0.000000e+00 : f32
      %244 = vector.broadcast %cst_100 : f32 to vector<6x88xf32>
      %c0_101 = arith.constant 0 : index
      %c0_102 = arith.constant 0 : index
      %c0_103 = arith.constant 0 : index
      %c0_104 = arith.constant 0 : index
      %245 = vector.load %arg2[%c0_101, %c0_102, %c0_103, %c0_104] : memref<4x1x6x132xf32, #tpu.memory_space<vmem>>, vector<1x1x6x88xf32>
      %246 = vector.shape_cast %245 : vector<1x1x6x88xf32> to vector<6x88xf32>
      %c0_105 = arith.constant 0 : index
      %c0_106 = arith.constant 0 : index
      %c0_107 = arith.constant 0 : index
      %c0_108 = arith.constant 0 : index
      %247 = vector.load %arg3[%c0_105, %c0_106, %c0_107, %c0_108] : memref<1x9x6x1xf32, #tpu.memory_space<vmem>>, vector<1x1x6x1xf32>
      %248 = vector.shape_cast %247 : vector<1x1x6x1xf32> to vector<6x1xf32>
      %249 = vector.broadcast %248 : vector<6x1xf32> to vector<6x88xf32>
      %250 = arith.mulf %246, %249 : vector<6x88xf32>
      %251 = arith.addf %244, %250 : vector<6x88xf32>
      %c1_109 = arith.constant 1 : index
      %c0_110 = arith.constant 0 : index
      %c0_111 = arith.constant 0 : index
      %c1_112 = arith.constant 1 : index
      %252 = vector.load %arg2[%c1_109, %c0_110, %c0_111, %c1_112] : memref<4x1x6x132xf32, #tpu.memory_space<vmem>>, vector<1x1x6x88xf32>
      %253 = vector.shape_cast %252 : vector<1x1x6x88xf32> to vector<6x88xf32>
      %c0_113 = arith.constant 0 : index
      %c1_114 = arith.constant 1 : index
      %c0_115 = arith.constant 0 : index
      %c0_116 = arith.constant 0 : index
      %254 = vector.load %arg3[%c0_113, %c1_114, %c0_115, %c0_116] : memref<1x9x6x1xf32, #tpu.memory_space<vmem>>, vector<1x1x6x1xf32>
      %255 = vector.shape_cast %254 : vector<1x1x6x1xf32> to vector<6x1xf32>
      %256 = vector.broadcast %255 : vector<6x1xf32> to vector<6x88xf32>
      %257 = arith.mulf %253, %256 : vector<6x88xf32>
      %258 = arith.addf %251, %257 : vector<6x88xf32>
      %c0_117 = arith.constant 0 : index
      %c0_118 = arith.constant 0 : index
      %c0_119 = arith.constant 0 : index
      %c3_120 = arith.constant 3 : index
      %259 = vector.load %arg2[%c0_117, %c0_118, %c0_119, %c3_120] : memref<4x1x6x132xf32, #tpu.memory_space<vmem>>, vector<1x1x6x88xf32>
      %260 = vector.shape_cast %259 : vector<1x1x6x88xf32> to vector<6x88xf32>
      %c0_121 = arith.constant 0 : index
      %c2_122 = arith.constant 2 : index
      %c0_123 = arith.constant 0 : index
      %c0_124 = arith.constant 0 : index
      %261 = vector.load %arg3[%c0_121, %c2_122, %c0_123, %c0_124] : memref<1x9x6x1xf32, #tpu.memory_space<vmem>>, vector<1x1x6x1xf32>
      %262 = vector.shape_cast %261 : vector<1x1x6x1xf32> to vector<6x1xf32>
      %263 = vector.broadcast %262 : vector<6x1xf32> to vector<6x88xf32>
      %264 = arith.mulf %260, %263 : vector<6x88xf32>
      %265 = arith.addf %258, %264 : vector<6x88xf32>
      %c2_125 = arith.constant 2 : index
      %c0_126 = arith.constant 0 : index
      %c0_127 = arith.constant 0 : index
      %c11 = arith.constant 11 : index
      %266 = vector.load %arg2[%c2_125, %c0_126, %c0_127, %c11] : memref<4x1x6x132xf32, #tpu.memory_space<vmem>>, vector<1x1x6x88xf32>
      %267 = vector.shape_cast %266 : vector<1x1x6x88xf32> to vector<6x88xf32>
      %c0_128 = arith.constant 0 : index
      %c3_129 = arith.constant 3 : index
      %c0_130 = arith.constant 0 : index
      %c0_131 = arith.constant 0 : index
      %268 = vector.load %arg3[%c0_128, %c3_129, %c0_130, %c0_131] : memref<1x9x6x1xf32, #tpu.memory_space<vmem>>, vector<1x1x6x1xf32>
      %269 = vector.shape_cast %268 : vector<1x1x6x1xf32> to vector<6x1xf32>
      %270 = vector.broadcast %269 : vector<6x1xf32> to vector<6x88xf32>
      %271 = arith.mulf %267, %270 : vector<6x88xf32>
      %272 = arith.addf %265, %271 : vector<6x88xf32>
      %c3_132 = arith.constant 3 : index
      %c0_133 = arith.constant 0 : index
      %c0_134 = arith.constant 0 : index
      %c12 = arith.constant 12 : index
      %273 = vector.load %arg2[%c3_132, %c0_133, %c0_134, %c12] : memref<4x1x6x132xf32, #tpu.memory_space<vmem>>, vector<1x1x6x88xf32>
      %274 = vector.shape_cast %273 : vector<1x1x6x88xf32> to vector<6x88xf32>
      %c0_135 = arith.constant 0 : index
      %c4_136 = arith.constant 4 : index
      %c0_137 = arith.constant 0 : index
      %c0_138 = arith.constant 0 : index
      %275 = vector.load %arg3[%c0_135, %c4_136, %c0_137, %c0_138] : memref<1x9x6x1xf32, #tpu.memory_space<vmem>>, vector<1x1x6x1xf32>
      %276 = vector.shape_cast %275 : vector<1x1x6x1xf32> to vector<6x1xf32>
      %277 = vector.broadcast %276 : vector<6x1xf32> to vector<6x88xf32>
      %278 = arith.mulf %274, %277 : vector<6x88xf32>
      %279 = arith.addf %272, %278 : vector<6x88xf32>
      %c2_139 = arith.constant 2 : index
      %c0_140 = arith.constant 0 : index
      %c0_141 = arith.constant 0 : index
      %c14 = arith.constant 14 : index
      %280 = vector.load %arg2[%c2_139, %c0_140, %c0_141, %c14] : memref<4x1x6x132xf32, #tpu.memory_space<vmem>>, vector<1x1x6x88xf32>
      %281 = vector.shape_cast %280 : vector<1x1x6x88xf32> to vector<6x88xf32>
      %c0_142 = arith.constant 0 : index
      %c5_143 = arith.constant 5 : index
      %c0_144 = arith.constant 0 : index
      %c0_145 = arith.constant 0 : index
      %282 = vector.load %arg3[%c0_142, %c5_143, %c0_144, %c0_145] : memref<1x9x6x1xf32, #tpu.memory_space<vmem>>, vector<1x1x6x1xf32>
      %283 = vector.shape_cast %282 : vector<1x1x6x1xf32> to vector<6x1xf32>
      %284 = vector.broadcast %283 : vector<6x1xf32> to vector<6x88xf32>
      %285 = arith.mulf %281, %284 : vector<6x88xf32>
      %286 = arith.addf %279, %285 : vector<6x88xf32>
      %c0_146 = arith.constant 0 : index
      %c0_147 = arith.constant 0 : index
      %c0_148 = arith.constant 0 : index
      %c33 = arith.constant 33 : index
      %287 = vector.load %arg2[%c0_146, %c0_147, %c0_148, %c33] : memref<4x1x6x132xf32, #tpu.memory_space<vmem>>, vector<1x1x6x88xf32>
      %288 = vector.shape_cast %287 : vector<1x1x6x88xf32> to vector<6x88xf32>
      %c0_149 = arith.constant 0 : index
      %c6 = arith.constant 6 : index
      %c0_150 = arith.constant 0 : index
      %c0_151 = arith.constant 0 : index
      %289 = vector.load %arg3[%c0_149, %c6, %c0_150, %c0_151] : memref<1x9x6x1xf32, #tpu.memory_space<vmem>>, vector<1x1x6x1xf32>
      %290 = vector.shape_cast %289 : vector<1x1x6x1xf32> to vector<6x1xf32>
      %291 = vector.broadcast %290 : vector<6x1xf32> to vector<6x88xf32>
      %292 = arith.mulf %288, %291 : vector<6x88xf32>
      %293 = arith.addf %286, %292 : vector<6x88xf32>
      %c1_152 = arith.constant 1 : index
      %c0_153 = arith.constant 0 : index
      %c0_154 = arith.constant 0 : index
      %c34 = arith.constant 34 : index
      %294 = vector.load %arg2[%c1_152, %c0_153, %c0_154, %c34] : memref<4x1x6x132xf32, #tpu.memory_space<vmem>>, vector<1x1x6x88xf32>
      %295 = vector.shape_cast %294 : vector<1x1x6x88xf32> to vector<6x88xf32>
      %c0_155 = arith.constant 0 : index
      %c7_156 = arith.constant 7 : index
      %c0_157 = arith.constant 0 : index
      %c0_158 = arith.constant 0 : index
      %296 = vector.load %arg3[%c0_155, %c7_156, %c0_157, %c0_158] : memref<1x9x6x1xf32, #tpu.memory_space<vmem>>, vector<1x1x6x1xf32>
      %297 = vector.shape_cast %296 : vector<1x1x6x1xf32> to vector<6x1xf32>
      %298 = vector.broadcast %297 : vector<6x1xf32> to vector<6x88xf32>
      %299 = arith.mulf %295, %298 : vector<6x88xf32>
      %300 = arith.addf %293, %299 : vector<6x88xf32>
      %c0_159 = arith.constant 0 : index
      %c0_160 = arith.constant 0 : index
      %c0_161 = arith.constant 0 : index
      %c36 = arith.constant 36 : index
      %301 = vector.load %arg2[%c0_159, %c0_160, %c0_161, %c36] : memref<4x1x6x132xf32, #tpu.memory_space<vmem>>, vector<1x1x6x88xf32>
      %302 = vector.shape_cast %301 : vector<1x1x6x88xf32> to vector<6x88xf32>
      %c0_162 = arith.constant 0 : index
      %c8 = arith.constant 8 : index
      %c0_163 = arith.constant 0 : index
      %c0_164 = arith.constant 0 : index
      %303 = vector.load %arg3[%c0_162, %c8, %c0_163, %c0_164] : memref<1x9x6x1xf32, #tpu.memory_space<vmem>>, vector<1x1x6x1xf32>
      %304 = vector.shape_cast %303 : vector<1x1x6x1xf32> to vector<6x1xf32>
      %305 = vector.broadcast %304 : vector<6x1xf32> to vector<6x88xf32>
      %306 = arith.mulf %302, %305 : vector<6x88xf32>
      %307 = arith.addf %300, %306 : vector<6x88xf32>
      %c0_165 = arith.constant 0 : index
      %c0_166 = arith.constant 0 : index
      %308 = vector.load %arg8[%c0_165, %c0_166] : memref<6x88xf32, #tpu.memory_space<vmem>>, vector<6x88xf32>
      tpu.vector_store %arg8[%c0_165, %c0_166], %307 {strides = array<i32>} : memref<6x88xf32, #tpu.memory_space<vmem>>, vector<6x88xf32>,
    } else {
    }
    %c1_i32 = arith.constant 1 : i32
    %3 = arith.cmpi eq, %arg1, %c1_i32 : i32
    %4 = arith.extui %3 : i1 to i32
    %c0_i32_1 = arith.constant 0 : i32
    %5 = arith.cmpi ne, %4, %c0_i32_1 : i32
    scf.if %5 {
      %cst_100 = arith.constant 0.000000e+00 : f32
      %244 = vector.broadcast %cst_100 : f32 to vector<6x88xf32>
      %c3_101 = arith.constant 3 : index
      %c0_102 = arith.constant 0 : index
      %c0_103 = arith.constant 0 : index
      %c0_104 = arith.constant 0 : index
      %245 = vector.load %arg2[%c3_101, %c0_102, %c0_103, %c0_104] : memref<4x1x6x132xf32, #tpu.memory_space<vmem>>, vector<1x1x6x88xf32>
      %246 = vector.shape_cast %245 : vector<1x1x6x88xf32> to vector<6x88xf32>
      %c0_105 = arith.constant 0 : index
      %c0_106 = arith.constant 0 : index
      %c0_107 = arith.constant 0 : index
      %c0_108 = arith.constant 0 : index
      %247 = vector.load %arg3[%c0_105, %c0_106, %c0_107, %c0_108] : memref<1x9x6x1xf32, #tpu.memory_space<vmem>>, vector<1x1x6x1xf32>
      %248 = vector.shape_cast %247 : vector<1x1x6x1xf32> to vector<6x1xf32>
      %249 = vector.broadcast %248 : vector<6x1xf32> to vector<6x88xf32>
      %250 = arith.mulf %246, %249 : vector<6x88xf32>
      %251 = arith.addf %244, %250 : vector<6x88xf32>
      %c3_109 = arith.constant 3 : index
      %c0_110 = arith.constant 0 : index
      %c0_111 = arith.constant 0 : index
      %c1_112 = arith.constant 1 : index
      %252 = vector.load %arg2[%c3_109, %c0_110, %c0_111, %c1_112] : memref<4x1x6x132xf32, #tpu.memory_space<vmem>>, vector<1x1x6x88xf32>
      %253 = vector.shape_cast %252 : vector<1x1x6x88xf32> to vector<6x88xf32>
      %c0_113 = arith.constant 0 : index
      %c1_114 = arith.constant 1 : index
      %c0_115 = arith.constant 0 : index
      %c0_116 = arith.constant 0 : index
      %254 = vector.load %arg3[%c0_113, %c1_114, %c0_115, %c0_116] : memref<1x9x6x1xf32, #tpu.memory_space<vmem>>, vector<1x1x6x1xf32>
      %255 = vector.shape_cast %254 : vector<1x1x6x1xf32> to vector<6x1xf32>
      %256 = vector.broadcast %255 : vector<6x1xf32> to vector<6x88xf32>
      %257 = arith.mulf %253, %256 : vector<6x88xf32>
      %258 = arith.addf %251, %257 : vector<6x88xf32>
      %c3_117 = arith.constant 3 : index
      %c0_118 = arith.constant 0 : index
      %c0_119 = arith.constant 0 : index
      %c2_120 = arith.constant 2 : index
      %259 = vector.load %arg2[%c3_117, %c0_118, %c0_119, %c2_120] : memref<4x1x6x132xf32, #tpu.memory_space<vmem>>, vector<1x1x6x88xf32>
      %260 = vector.shape_cast %259 : vector<1x1x6x88xf32> to vector<6x88xf32>
      %c0_121 = arith.constant 0 : index
      %c2_122 = arith.constant 2 : index
      %c0_123 = arith.constant 0 : index
      %c0_124 = arith.constant 0 : index
      %261 = vector.load %arg3[%c0_121, %c2_122, %c0_123, %c0_124] : memref<1x9x6x1xf32, #tpu.memory_space<vmem>>, vector<1x1x6x1xf32>
      %262 = vector.shape_cast %261 : vector<1x1x6x1xf32> to vector<6x1xf32>
      %263 = vector.broadcast %262 : vector<6x1xf32> to vector<6x88xf32>
      %264 = arith.mulf %260, %263 : vector<6x88xf32>
      %265 = arith.addf %258, %264 : vector<6x88xf32>
      %c3_125 = arith.constant 3 : index
      %c0_126 = arith.constant 0 : index
      %c0_127 = arith.constant 0 : index
      %c11 = arith.constant 11 : index
      %266 = vector.load %arg2[%c3_125, %c0_126, %c0_127, %c11] : memref<4x1x6x132xf32, #tpu.memory_space<vmem>>, vector<1x1x6x88xf32>
      %267 = vector.shape_cast %266 : vector<1x1x6x88xf32> to vector<6x88xf32>
      %c0_128 = arith.constant 0 : index
      %c3_129 = arith.constant 3 : index
      %c0_130 = arith.constant 0 : index
      %c0_131 = arith.constant 0 : index
      %268 = vector.load %arg3[%c0_128, %c3_129, %c0_130, %c0_131] : memref<1x9x6x1xf32, #tpu.memory_space<vmem>>, vector<1x1x6x1xf32>
      %269 = vector.shape_cast %268 : vector<1x1x6x1xf32> to vector<6x1xf32>
      %270 = vector.broadcast %269 : vector<6x1xf32> to vector<6x88xf32>
      %271 = arith.mulf %267, %270 : vector<6x88xf32>
      %272 = arith.addf %265, %271 : vector<6x88xf32>
      %c3_132 = arith.constant 3 : index
      %c0_133 = arith.constant 0 : index
      %c0_134 = arith.constant 0 : index
      %c12 = arith.constant 12 : index
      %273 = vector.load %arg2[%c3_132, %c0_133, %c0_134, %c12] : memref<4x1x6x132xf32, #tpu.memory_space<vmem>>, vector<1x1x6x88xf32>
      %274 = vector.shape_cast %273 : vector<1x1x6x88xf32> to vector<6x88xf32>
      %c0_135 = arith.constant 0 : index
      %c4_136 = arith.constant 4 : index
      %c0_137 = arith.constant 0 : index
      %c0_138 = arith.constant 0 : index
      %275 = vector.load %arg3[%c0_135, %c4_136, %c0_137, %c0_138] : memref<1x9x6x1xf32, #tpu.memory_space<vmem>>, vector<1x1x6x1xf32>
      %276 = vector.shape_cast %275 : vector<1x1x6x1xf32> to vector<6x1xf32>
      %277 = vector.broadcast %276 : vector<6x1xf32> to vector<6x88xf32>
      %278 = arith.mulf %274, %277 : vector<6x88xf32>
      %279 = arith.addf %272, %278 : vector<6x88xf32>
      %c3_139 = arith.constant 3 : index
      %c0_140 = arith.constant 0 : index
      %c0_141 = arith.constant 0 : index
      %c13 = arith.constant 13 : index
      %280 = vector.load %arg2[%c3_139, %c0_140, %c0_141, %c13] : memref<4x1x6x132xf32, #tpu.memory_space<vmem>>, vector<1x1x6x88xf32>
      %281 = vector.shape_cast %280 : vector<1x1x6x88xf32> to vector<6x88xf32>
      %c0_142 = arith.constant 0 : index
      %c5_143 = arith.constant 5 : index
      %c0_144 = arith.constant 0 : index
      %c0_145 = arith.constant 0 : index
      %282 = vector.load %arg3[%c0_142, %c5_143, %c0_144, %c0_145] : memref<1x9x6x1xf32, #tpu.memory_space<vmem>>, vector<1x1x6x1xf32>
      %283 = vector.shape_cast %282 : vector<1x1x6x1xf32> to vector<6x1xf32>
      %284 = vector.broadcast %283 : vector<6x1xf32> to vector<6x88xf32>
      %285 = arith.mulf %281, %284 : vector<6x88xf32>
      %286 = arith.addf %279, %285 : vector<6x88xf32>
      %c3_146 = arith.constant 3 : index
      %c0_147 = arith.constant 0 : index
      %c0_148 = arith.constant 0 : index
      %c22 = arith.constant 22 : index
      %287 = vector.load %arg2[%c3_146, %c0_147, %c0_148, %c22] : memref<4x1x6x132xf32, #tpu.memory_space<vmem>>, vector<1x1x6x88xf32>
      %288 = vector.shape_cast %287 : vector<1x1x6x88xf32> to vector<6x88xf32>
      %c0_149 = arith.constant 0 : index
      %c6 = arith.constant 6 : index
      %c0_150 = arith.constant 0 : index
      %c0_151 = arith.constant 0 : index
      %289 = vector.load %arg3[%c0_149, %c6, %c0_150, %c0_151] : memref<1x9x6x1xf32, #tpu.memory_space<vmem>>, vector<1x1x6x1xf32>
      %290 = vector.shape_cast %289 : vector<1x1x6x1xf32> to vector<6x1xf32>
      %291 = vector.broadcast %290 : vector<6x1xf32> to vector<6x88xf32>
      %292 = arith.mulf %288, %291 : vector<6x88xf32>
      %293 = arith.addf %286, %292 : vector<6x88xf32>
      %c3_152 = arith.constant 3 : index
      %c0_153 = arith.constant 0 : index
      %c0_154 = arith.constant 0 : index
      %c23 = arith.constant 23 : index
      %294 = vector.load %arg2[%c3_152, %c0_153, %c0_154, %c23] : memref<4x1x6x132xf32, #tpu.memory_space<vmem>>, vector<1x1x6x88xf32>
      %295 = vector.shape_cast %294 : vector<1x1x6x88xf32> to vector<6x88xf32>
      %c0_155 = arith.constant 0 : index
      %c7_156 = arith.constant 7 : index
      %c0_157 = arith.constant 0 : index
      %c0_158 = arith.constant 0 : index
      %296 = vector.load %arg3[%c0_155, %c7_156, %c0_157, %c0_158] : memref<1x9x6x1xf32, #tpu.memory_space<vmem>>, vector<1x1x6x1xf32>
      %297 = vector.shape_cast %296 : vector<1x1x6x1xf32> to vector<6x1xf32>
      %298 = vector.broadcast %297 : vector<6x1xf32> to vector<6x88xf32>
      %299 = arith.mulf %295, %298 : vector<6x88xf32>
      %300 = arith.addf %293, %299 : vector<6x88xf32>
      %c3_159 = arith.constant 3 : index
      %c0_160 = arith.constant 0 : index
      %c0_161 = arith.constant 0 : index
      %c24 = arith.constant 24 : index
      %301 = vector.load %arg2[%c3_159, %c0_160, %c0_161, %c24] : memref<4x1x6x132xf32, #tpu.memory_space<vmem>>, vector<1x1x6x88xf32>
      %302 = vector.shape_cast %301 : vector<1x1x6x88xf32> to vector<6x88xf32>
      %c0_162 = arith.constant 0 : index
      %c8 = arith.constant 8 : index
      %c0_163 = arith.constant 0 : index
      %c0_164 = arith.constant 0 : index
      %303 = vector.load %arg3[%c0_162, %c8, %c0_163, %c0_164] : memref<1x9x6x1xf32, #tpu.memory_space<vmem>>, vector<1x1x6x1xf32>
      %304 = vector.shape_cast %303 : vector<1x1x6x1xf32> to vector<6x1xf32>
      %305 = vector.broadcast %304 : vector<6x1xf32> to vector<6x88xf32>
      %306 = arith.mulf %302, %305 : vector<6x88xf32>
      %307 = arith.addf %300, %306 : vector<6x88xf32>
      %c0_165 = arith.constant 0 : index
      %c0_166 = arith.constant 0 : index
      %308 = vector.load %arg8[%c0_165, %c0_166] : memref<6x88xf32, #tpu.memory_space<vmem>>, vector<6x88xf32>
      tpu.vector_store %arg8[%c0_165, %c0_166], %307 {strides = array<i32>} : memref<6x88xf32, #tpu.memory_space<vmem>>, vector<6x88xf32>,
    } else {
    }
    %c2_i32 = arith.constant 2 : i32
    %6 = arith.cmpi eq, %arg1, %c2_i32 : i32
    %7 = arith.extui %6 : i1 to i32
    %c0_i32_2 = arith.constant 0 : i32
    %8 = arith.cmpi ne, %7, %c0_i32_2 : i32
    scf.if %8 {
      %cst_100 = arith.constant 0.000000e+00 : f32
      %244 = vector.broadcast %cst_100 : f32 to vector<6x88xf32>
      %c0_101 = arith.constant 0 : index
      %c0_102 = arith.constant 0 : index
      %c0_103 = arith.constant 0 : index
      %c12 = arith.constant 12 : index
      %245 = vector.load %arg2[%c0_101, %c0_102, %c0_103, %c12] : memref<4x1x6x132xf32, #tpu.memory_space<vmem>>, vector<1x1x6x88xf32>
      %246 = vector.shape_cast %245 : vector<1x1x6x88xf32> to vector<6x88xf32>
      %c0_104 = arith.constant 0 : index
      %c0_105 = arith.constant 0 : index
      %c0_106 = arith.constant 0 : index
      %c0_107 = arith.constant 0 : index
      %247 = vector.load %arg3[%c0_104, %c0_105, %c0_106, %c0_107] : memref<1x9x6x1xf32, #tpu.memory_space<vmem>>, vector<1x1x6x1xf32>
      %248 = vector.shape_cast %247 : vector<1x1x6x1xf32> to vector<6x1xf32>
      %249 = vector.broadcast %248 : vector<6x1xf32> to vector<6x88xf32>
      %250 = arith.mulf %246, %249 : vector<6x88xf32>
      %251 = arith.addf %244, %250 : vector<6x88xf32>
      %c1_108 = arith.constant 1 : index
      %c0_109 = arith.constant 0 : index
      %c0_110 = arith.constant 0 : index
      %c12_111 = arith.constant 12 : index
      %252 = vector.load %arg2[%c1_108, %c0_109, %c0_110, %c12_111] : memref<4x1x6x132xf32, #tpu.memory_space<vmem>>, vector<1x1x6x88xf32>
      %253 = vector.shape_cast %252 : vector<1x1x6x88xf32> to vector<6x88xf32>
      %c0_112 = arith.constant 0 : index
      %c1_113 = arith.constant 1 : index
      %c0_114 = arith.constant 0 : index
      %c0_115 = arith.constant 0 : index
      %254 = vector.load %arg3[%c0_112, %c1_113, %c0_114, %c0_115] : memref<1x9x6x1xf32, #tpu.memory_space<vmem>>, vector<1x1x6x1xf32>
      %255 = vector.shape_cast %254 : vector<1x1x6x1xf32> to vector<6x1xf32>
      %256 = vector.broadcast %255 : vector<6x1xf32> to vector<6x88xf32>
      %257 = arith.mulf %253, %256 : vector<6x88xf32>
      %258 = arith.addf %251, %257 : vector<6x88xf32>
      %c0_116 = arith.constant 0 : index
      %c0_117 = arith.constant 0 : index
      %c0_118 = arith.constant 0 : index
      %c13 = arith.constant 13 : index
      %259 = vector.load %arg2[%c0_116, %c0_117, %c0_118, %c13] : memref<4x1x6x132xf32, #tpu.memory_space<vmem>>, vector<1x1x6x88xf32>
      %260 = vector.shape_cast %259 : vector<1x1x6x88xf32> to vector<6x88xf32>
      %c0_119 = arith.constant 0 : index
      %c2_120 = arith.constant 2 : index
      %c0_121 = arith.constant 0 : index
      %c0_122 = arith.constant 0 : index
      %261 = vector.load %arg3[%c0_119, %c2_120, %c0_121, %c0_122] : memref<1x9x6x1xf32, #tpu.memory_space<vmem>>, vector<1x1x6x1xf32>
      %262 = vector.shape_cast %261 : vector<1x1x6x1xf32> to vector<6x1xf32>
      %263 = vector.broadcast %262 : vector<6x1xf32> to vector<6x88xf32>
      %264 = arith.mulf %260, %263 : vector<6x88xf32>
      %265 = arith.addf %258, %264 : vector<6x88xf32>
      %c2_123 = arith.constant 2 : index
      %c0_124 = arith.constant 0 : index
      %c0_125 = arith.constant 0 : index
      %c12_126 = arith.constant 12 : index
      %266 = vector.load %arg2[%c2_123, %c0_124, %c0_125, %c12_126] : memref<4x1x6x132xf32, #tpu.memory_space<vmem>>, vector<1x1x6x88xf32>
      %267 = vector.shape_cast %266 : vector<1x1x6x88xf32> to vector<6x88xf32>
      %c0_127 = arith.constant 0 : index
      %c3_128 = arith.constant 3 : index
      %c0_129 = arith.constant 0 : index
      %c0_130 = arith.constant 0 : index
      %268 = vector.load %arg3[%c0_127, %c3_128, %c0_129, %c0_130] : memref<1x9x6x1xf32, #tpu.memory_space<vmem>>, vector<1x1x6x1xf32>
      %269 = vector.shape_cast %268 : vector<1x1x6x1xf32> to vector<6x1xf32>
      %270 = vector.broadcast %269 : vector<6x1xf32> to vector<6x88xf32>
      %271 = arith.mulf %267, %270 : vector<6x88xf32>
      %272 = arith.addf %265, %271 : vector<6x88xf32>
      %c3_131 = arith.constant 3 : index
      %c0_132 = arith.constant 0 : index
      %c0_133 = arith.constant 0 : index
      %c12_134 = arith.constant 12 : index
      %273 = vector.load %arg2[%c3_131, %c0_132, %c0_133, %c12_134] : memref<4x1x6x132xf32, #tpu.memory_space<vmem>>, vector<1x1x6x88xf32>
      %274 = vector.shape_cast %273 : vector<1x1x6x88xf32> to vector<6x88xf32>
      %c0_135 = arith.constant 0 : index
      %c4_136 = arith.constant 4 : index
      %c0_137 = arith.constant 0 : index
      %c0_138 = arith.constant 0 : index
      %275 = vector.load %arg3[%c0_135, %c4_136, %c0_137, %c0_138] : memref<1x9x6x1xf32, #tpu.memory_space<vmem>>, vector<1x1x6x1xf32>
      %276 = vector.shape_cast %275 : vector<1x1x6x1xf32> to vector<6x1xf32>
      %277 = vector.broadcast %276 : vector<6x1xf32> to vector<6x88xf32>
      %278 = arith.mulf %274, %277 : vector<6x88xf32>
      %279 = arith.addf %272, %278 : vector<6x88xf32>
      %c2_139 = arith.constant 2 : index
      %c0_140 = arith.constant 0 : index
      %c0_141 = arith.constant 0 : index
      %c13_142 = arith.constant 13 : index
      %280 = vector.load %arg2[%c2_139, %c0_140, %c0_141, %c13_142] : memref<4x1x6x132xf32, #tpu.memory_space<vmem>>, vector<1x1x6x88xf32>
      %281 = vector.shape_cast %280 : vector<1x1x6x88xf32> to vector<6x88xf32>
      %c0_143 = arith.constant 0 : index
      %c5_144 = arith.constant 5 : index
      %c0_145 = arith.constant 0 : index
      %c0_146 = arith.constant 0 : index
      %282 = vector.load %arg3[%c0_143, %c5_144, %c0_145, %c0_146] : memref<1x9x6x1xf32, #tpu.memory_space<vmem>>, vector<1x1x6x1xf32>
      %283 = vector.shape_cast %282 : vector<1x1x6x1xf32> to vector<6x1xf32>
      %284 = vector.broadcast %283 : vector<6x1xf32> to vector<6x88xf32>
      %285 = arith.mulf %281, %284 : vector<6x88xf32>
      %286 = arith.addf %279, %285 : vector<6x88xf32>
      %c0_147 = arith.constant 0 : index
      %c0_148 = arith.constant 0 : index
      %c0_149 = arith.constant 0 : index
      %c23 = arith.constant 23 : index
      %287 = vector.load %arg2[%c0_147, %c0_148, %c0_149, %c23] : memref<4x1x6x132xf32, #tpu.memory_space<vmem>>, vector<1x1x6x88xf32>
      %288 = vector.shape_cast %287 : vector<1x1x6x88xf32> to vector<6x88xf32>
      %c0_150 = arith.constant 0 : index
      %c6 = arith.constant 6 : index
      %c0_151 = arith.constant 0 : index
      %c0_152 = arith.constant 0 : index
      %289 = vector.load %arg3[%c0_150, %c6, %c0_151, %c0_152] : memref<1x9x6x1xf32, #tpu.memory_space<vmem>>, vector<1x1x6x1xf32>
      %290 = vector.shape_cast %289 : vector<1x1x6x1xf32> to vector<6x1xf32>
      %291 = vector.broadcast %290 : vector<6x1xf32> to vector<6x88xf32>
      %292 = arith.mulf %288, %291 : vector<6x88xf32>
      %293 = arith.addf %286, %292 : vector<6x88xf32>
      %c1_153 = arith.constant 1 : index
      %c0_154 = arith.constant 0 : index
      %c0_155 = arith.constant 0 : index
      %c23_156 = arith.constant 23 : index
      %294 = vector.load %arg2[%c1_153, %c0_154, %c0_155, %c23_156] : memref<4x1x6x132xf32, #tpu.memory_space<vmem>>, vector<1x1x6x88xf32>
      %295 = vector.shape_cast %294 : vector<1x1x6x88xf32> to vector<6x88xf32>
      %c0_157 = arith.constant 0 : index
      %c7_158 = arith.constant 7 : index
      %c0_159 = arith.constant 0 : index
      %c0_160 = arith.constant 0 : index
      %296 = vector.load %arg3[%c0_157, %c7_158, %c0_159, %c0_160] : memref<1x9x6x1xf32, #tpu.memory_space<vmem>>, vector<1x1x6x1xf32>
      %297 = vector.shape_cast %296 : vector<1x1x6x1xf32> to vector<6x1xf32>
      %298 = vector.broadcast %297 : vector<6x1xf32> to vector<6x88xf32>
      %299 = arith.mulf %295, %298 : vector<6x88xf32>
      %300 = arith.addf %293, %299 : vector<6x88xf32>
      %c0_161 = arith.constant 0 : index
      %c0_162 = arith.constant 0 : index
      %c0_163 = arith.constant 0 : index
      %c24 = arith.constant 24 : index
      %301 = vector.load %arg2[%c0_161, %c0_162, %c0_163, %c24] : memref<4x1x6x132xf32, #tpu.memory_space<vmem>>, vector<1x1x6x88xf32>
      %302 = vector.shape_cast %301 : vector<1x1x6x88xf32> to vector<6x88xf32>
      %c0_164 = arith.constant 0 : index
      %c8 = arith.constant 8 : index
      %c0_165 = arith.constant 0 : index
      %c0_166 = arith.constant 0 : index
      %303 = vector.load %arg3[%c0_164, %c8, %c0_165, %c0_166] : memref<1x9x6x1xf32, #tpu.memory_space<vmem>>, vector<1x1x6x1xf32>
      %304 = vector.shape_cast %303 : vector<1x1x6x1xf32> to vector<6x1xf32>
      %305 = vector.broadcast %304 : vector<6x1xf32> to vector<6x88xf32>
      %306 = arith.mulf %302, %305 : vector<6x88xf32>
      %307 = arith.addf %300, %306 : vector<6x88xf32>
      %c0_167 = arith.constant 0 : index
      %c0_168 = arith.constant 0 : index
      %308 = vector.load %arg8[%c0_167, %c0_168] : memref<6x88xf32, #tpu.memory_space<vmem>>, vector<6x88xf32>
      tpu.vector_store %arg8[%c0_167, %c0_168], %307 {strides = array<i32>} : memref<6x88xf32, #tpu.memory_space<vmem>>, vector<6x88xf32>,
    } else {
    }
    %c0 = arith.constant 0 : index
    %c0_3 = arith.constant 0 : index
    %c0_4 = arith.constant 0 : index
    %9 = vector.load %arg4[%c0, %c0_3, %c0_4] : memref<1x6x9xf32, #tpu.memory_space<vmem>>, vector<1x6x1xf32>
    %10 = vector.shape_cast %9 : vector<1x6x1xf32> to vector<6x1xf32>
    %c0_5 = arith.constant 0 : index
    %c0_6 = arith.constant 0 : index
    %c1 = arith.constant 1 : index
    %11 = vector.load %arg4[%c0_5, %c0_6, %c1] : memref<1x6x9xf32, #tpu.memory_space<vmem>>, vector<1x6x1xf32>
    %12 = vector.shape_cast %11 : vector<1x6x1xf32> to vector<6x1xf32>
    %c0_7 = arith.constant 0 : index
    %c0_8 = arith.constant 0 : index
    %c2 = arith.constant 2 : index
    %13 = vector.load %arg4[%c0_7, %c0_8, %c2] : memref<1x6x9xf32, #tpu.memory_space<vmem>>, vector<1x6x1xf32>
    %14 = vector.shape_cast %13 : vector<1x6x1xf32> to vector<6x1xf32>
    %c0_9 = arith.constant 0 : index
    %c0_10 = arith.constant 0 : index
    %c3 = arith.constant 3 : index
    %15 = vector.load %arg4[%c0_9, %c0_10, %c3] : memref<1x6x9xf32, #tpu.memory_space<vmem>>, vector<1x6x1xf32>
    %16 = vector.shape_cast %15 : vector<1x6x1xf32> to vector<6x1xf32>
    %c0_11 = arith.constant 0 : index
    %c0_12 = arith.constant 0 : index
    %c4 = arith.constant 4 : index
    %17 = vector.load %arg4[%c0_11, %c0_12, %c4] : memref<1x6x9xf32, #tpu.memory_space<vmem>>, vector<1x6x1xf32>
    %18 = vector.shape_cast %17 : vector<1x6x1xf32> to vector<6x1xf32>
    %c0_13 = arith.constant 0 : index
    %c0_14 = arith.constant 0 : index
    %c5 = arith.constant 5 : index
    %19 = vector.load %arg4[%c0_13, %c0_14, %c5] : memref<1x6x9xf32, #tpu.memory_space<vmem>>, vector<1x6x2xf32>
    %20 = vector.shape_cast %19 : vector<1x6x2xf32> to vector<6x2xf32>
    %c0_15 = arith.constant 0 : index
    %c0_16 = arith.constant 0 : index
    %c7 = arith.constant 7 : index
    %21 = vector.load %arg4[%c0_15, %c0_16, %c7] : memref<1x6x9xf32, #tpu.memory_space<vmem>>, vector<1x6x2xf32>
    %22 = vector.shape_cast %21 : vector<1x6x2xf32> to vector<6x2xf32>
    %c0_17 = arith.constant 0 : index
    %c0_18 = arith.constant 0 : index
    %23 = vector.load %arg6[%c0_17, %c0_18] : memref<1x88xf32, #tpu.memory_space<vmem>>, vector<1x88xf32>
    %c0_19 = arith.constant 0 : index
    %c0_20 = arith.constant 0 : index
    %24 = vector.load %arg8[%c0_19, %c0_20] : memref<6x88xf32, #tpu.memory_space<vmem>>, vector<6x88xf32>
    %25 = vector.broadcast %10 : vector<6x1xf32> to vector<6x88xf32>
    %26 = arith.addf %24, %25 : vector<6x88xf32>
    %cst = arith.constant 3.000000e+00 : f32
    %27 = vector.broadcast %cst : f32 to vector<6x88xf32>
    %28 = arith.addf %26, %27 : vector<6x88xf32>
    %cst_21 = arith.constant 0.000000e+00 : f32
    %cst_22 = arith.constant 6.000000e+00 : f32
    %29 = vector.broadcast %cst_21 : f32 to vector<6x88xf32>
    %30 = arith.maximumf %29, %28 : vector<6x88xf32>
    %31 = vector.broadcast %cst_22 : f32 to vector<6x88xf32>
    %32 = arith.minimumf %31, %30 : vector<6x88xf32>
    %33 = arith.mulf %26, %32 : vector<6x88xf32>
    %cst_23 = arith.constant 0.166666672 : f32
    %34 = vector.broadcast %cst_23 : f32 to vector<6x88xf32>
    %35 = arith.mulf %33, %34 : vector<6x88xf32>
    %cst_24 = arith.constant 0.000000e+00 : f32
    %cst_25 = arith.constant 6.000000e+00 : f32
    %36 = vector.broadcast %cst_24 : f32 to vector<6x88xf32>
    %37 = arith.maximumf %36, %26 : vector<6x88xf32>
    %38 = vector.broadcast %cst_25 : f32 to vector<6x88xf32>
    %39 = arith.minimumf %38, %37 : vector<6x88xf32>
    %cst_26 = arith.constant 0.000000e+00 : f32
    %40 = vector.broadcast %cst_26 : f32 to vector<6x88xf32>
    %41 = arith.minimumf %26, %40 : vector<6x88xf32>
    %cst_27 = arith.constant 0.00999999977 : f32
    %42 = vector.broadcast %cst_27 : f32 to vector<6x88xf32>
    %43 = arith.mulf %42, %41 : vector<6x88xf32>
    %44 = arith.addf %39, %43 : vector<6x88xf32>
    %cst_28 = arith.constant -3.000000e+00 : f32
    %45 = vector.broadcast %cst_28 : f32 to vector<6x88xf32>
    %46 = arith.cmpf oge, %26, %45 : vector<6x88xf32>
    %cst_29 = arith.constant 3.000000e+00 : f32
    %47 = vector.broadcast %cst_29 : f32 to vector<6x88xf32>
    %48 = arith.cmpf ole, %26, %47 : vector<6x88xf32>
    %49 = arith.andi %46, %48 : vector<6x88xi1>
    %50 = arith.select %49, %35, %44 : vector<6x88xi1>, vector<6x88xf32>
    %c0_30 = arith.constant 0 : index
    %c0_31 = arith.constant 0 : index
    %c0_32 = arith.constant 0 : index
    %51 = vector.load %arg5[%c0_30, %c0_31, %c0_32] : memref<1x6x6xf32, #tpu.memory_space<vmem>>, vector<1x6x6xf32>
    %52 = vector.shape_cast %51 : vector<1x6x6xf32> to vector<6x6xf32>
    %cst_33 = arith.constant dense<0.000000e+00> : vector<6x88xf32>
    %53 = tpu.matmul %52, %50, %cst_33 {dimension_numbers = #tpu.dot_dimension_numbers<[1], [0], [0], [1], [0, 0, 1, 1], [], []>} : vector<6x6xf32>, vector<6x88xf32>, vector<6x88xf32> -> vector<6x88xf32>
    %54 = vector.broadcast %12 : vector<6x1xf32> to vector<6x88xf32>
    %55 = arith.addf %53, %54 : vector<6x88xf32>
    %56 = tpu.iota {dimensions = array<i32: 0>} : vector<6x1xi32>
    %57 = vector.broadcast %23 : vector<1x88xf32> to vector<6x88xf32>
    %58 = arith.mulf %55, %57 : vector<6x88xf32>
    %cst_34 = arith.constant dense<0.000000e+00> : vector<6xf32>
    %59 = vector.multi_reduction <add>, %58, %cst_34 [1] : vector<6x88xf32> to vector<6xf32>
    %60 = vector.shape_cast %59 : vector<6xf32> to vector<6x1xf32>
    %cst_35 = arith.constant 0.000000e+00 : f32
    %61 = vector.broadcast %cst_35 : f32 to vector<6x1xf32>
    %c0_i32_36 = arith.constant 0 : i32
    %62 = vector.broadcast %c0_i32_36 : i32 to vector<6x1xi32>
    %63 = arith.cmpi sge, %56, %62 : vector<6x1xi32>
    %c2_i32_37 = arith.constant 2 : i32
    %64 = vector.broadcast %c2_i32_37 : i32 to vector<6x1xi32>
    %65 = arith.cmpi slt, %56, %64 : vector<6x1xi32>
    %66 = arith.andi %63, %65 : vector<6x1xi1>
    %cst_38 = arith.constant 0.000000e+00 : f32
    %67 = vector.broadcast %cst_38 : f32 to vector<6x1xf32>
    %68 = arith.select %66, %60, %67 : vector<6x1xi1>, vector<6x1xf32>
    %69 = vector.shape_cast %68 : vector<6x1xf32> to vector<1x6x1xf32>
    %cst_39 = arith.constant dense<0.000000e+00> : vector<1xf32>
    %70 = vector.multi_reduction <add>, %69, %cst_39 [1, 2] : vector<1x6x1xf32> to vector<1xf32>
    %71 = vector.shape_cast %70 : vector<1xf32> to vector<1x1x1xf32>
    %72 = vector.extract %71[0, 0, 0] : f32 from vector<1x1x1xf32>
    %cst_40 = arith.constant 1.280000e+02 : f32
    %73 = arith.divf %72, %cst_40 : f32
    %cst_41 = arith.constant 0.000000e+00 : f32
    %74 = vector.broadcast %73 : f32 to vector<6x1xf32>
    %75 = vector.broadcast %cst_41 : f32 to vector<6x1xf32>
    %76 = arith.select %66, %74, %75 : vector<6x1xi1>, vector<6x1xf32>
    %77 = arith.addf %61, %76 : vector<6x1xf32>
    %c2_i32_42 = arith.constant 2 : i32
    %78 = vector.broadcast %c2_i32_42 : i32 to vector<6x1xi32>
    %79 = arith.cmpi sge, %56, %78 : vector<6x1xi32>
    %c4_i32 = arith.constant 4 : i32
    %80 = vector.broadcast %c4_i32 : i32 to vector<6x1xi32>
    %81 = arith.cmpi slt, %56, %80 : vector<6x1xi32>
    %82 = arith.andi %79, %81 : vector<6x1xi1>
    %cst_43 = arith.constant 0.000000e+00 : f32
    %83 = vector.broadcast %cst_43 : f32 to vector<6x1xf32>
    %84 = arith.select %82, %60, %83 : vector<6x1xi1>, vector<6x1xf32>
    %85 = vector.shape_cast %84 : vector<6x1xf32> to vector<1x6x1xf32>
    %cst_44 = arith.constant dense<0.000000e+00> : vector<1xf32>
    %86 = vector.multi_reduction <add>, %85, %cst_44 [1, 2] : vector<1x6x1xf32> to vector<1xf32>
    %87 = vector.shape_cast %86 : vector<1xf32> to vector<1x1x1xf32>
    %88 = vector.extract %87[0, 0, 0] : f32 from vector<1x1x1xf32>
    %cst_45 = arith.constant 1.280000e+02 : f32
    %89 = arith.divf %88, %cst_45 : f32
    %cst_46 = arith.constant 0.000000e+00 : f32
    %90 = vector.broadcast %89 : f32 to vector<6x1xf32>
    %91 = vector.broadcast %cst_46 : f32 to vector<6x1xf32>
    %92 = arith.select %82, %90, %91 : vector<6x1xi1>, vector<6x1xf32>
    %93 = arith.addf %77, %92 : vector<6x1xf32>
    %c4_i32_47 = arith.constant 4 : i32
    %94 = vector.broadcast %c4_i32_47 : i32 to vector<6x1xi32>
    %95 = arith.cmpi sge, %56, %94 : vector<6x1xi32>
    %c6_i32 = arith.constant 6 : i32
    %96 = vector.broadcast %c6_i32 : i32 to vector<6x1xi32>
    %97 = arith.cmpi slt, %56, %96 : vector<6x1xi32>
    %98 = arith.andi %95, %97 : vector<6x1xi1>
    %cst_48 = arith.constant 0.000000e+00 : f32
    %99 = vector.broadcast %cst_48 : f32 to vector<6x1xf32>
    %100 = arith.select %98, %60, %99 : vector<6x1xi1>, vector<6x1xf32>
    %101 = vector.shape_cast %100 : vector<6x1xf32> to vector<1x6x1xf32>
    %cst_49 = arith.constant dense<0.000000e+00> : vector<1xf32>
    %102 = vector.multi_reduction <add>, %101, %cst_49 [1, 2] : vector<1x6x1xf32> to vector<1xf32>
    %103 = vector.shape_cast %102 : vector<1xf32> to vector<1x1x1xf32>
    %104 = vector.extract %103[0, 0, 0] : f32 from vector<1x1x1xf32>
    %cst_50 = arith.constant 1.280000e+02 : f32
    %105 = arith.divf %104, %cst_50 : f32
    %cst_51 = arith.constant 0.000000e+00 : f32
    %106 = vector.broadcast %105 : f32 to vector<6x1xf32>
    %107 = vector.broadcast %cst_51 : f32 to vector<6x1xf32>
    %108 = arith.select %98, %106, %107 : vector<6x1xi1>, vector<6x1xf32>
    %109 = arith.addf %93, %108 : vector<6x1xf32>
    %110 = vector.broadcast %109 : vector<6x1xf32> to vector<6x88xf32>
    %111 = arith.subf %55, %110 : vector<6x88xf32>
    %112 = vector.broadcast %23 : vector<1x88xf32> to vector<6x88xf32>
    %113 = arith.mulf %111, %112 : vector<6x88xf32>
    %114 = arith.mulf %113, %113 : vector<6x88xf32>
    %cst_52 = arith.constant dense<0.000000e+00> : vector<6xf32>
    %115 = vector.multi_reduction <add>, %114, %cst_52 [1] : vector<6x88xf32> to vector<6xf32>
    %116 = vector.shape_cast %115 : vector<6xf32> to vector<6x1xf32>
    %cst_53 = arith.constant 0.000000e+00 : f32
    %117 = vector.broadcast %cst_53 : f32 to vector<6x1xf32>
    %c0_i32_54 = arith.constant 0 : i32
    %118 = vector.broadcast %c0_i32_54 : i32 to vector<6x1xi32>
    %119 = arith.cmpi sge, %56, %118 : vector<6x1xi32>
    %c2_i32_55 = arith.constant 2 : i32
    %120 = vector.broadcast %c2_i32_55 : i32 to vector<6x1xi32>
    %121 = arith.cmpi slt, %56, %120 : vector<6x1xi32>
    %122 = arith.andi %119, %121 : vector<6x1xi1>
    %cst_56 = arith.constant 0.000000e+00 : f32
    %123 = vector.broadcast %cst_56 : f32 to vector<6x1xf32>
    %124 = arith.select %122, %116, %123 : vector<6x1xi1>, vector<6x1xf32>
    %125 = vector.shape_cast %124 : vector<6x1xf32> to vector<1x6x1xf32>
    %cst_57 = arith.constant dense<0.000000e+00> : vector<1xf32>
    %126 = vector.multi_reduction <add>, %125, %cst_57 [1, 2] : vector<1x6x1xf32> to vector<1xf32>
    %127 = vector.shape_cast %126 : vector<1xf32> to vector<1x1x1xf32>
    %128 = vector.extract %127[0, 0, 0] : f32 from vector<1x1x1xf32>
    %cst_58 = arith.constant 1.280000e+02 : f32
    %129 = arith.divf %128, %cst_58 : f32
    %cst_59 = arith.constant 9.99999974E-6 : f32
    %130 = arith.addf %129, %cst_59 : f32
    %131 = math.rsqrt %130 : f32
    %cst_60 = arith.constant 0.000000e+00 : f32
    %132 = vector.broadcast %131 : f32 to vector<6x1xf32>
    %133 = vector.broadcast %cst_60 : f32 to vector<6x1xf32>
    %134 = arith.select %122, %132, %133 : vector<6x1xi1>, vector<6x1xf32>
    %135 = arith.addf %117, %134 : vector<6x1xf32>
    %c2_i32_61 = arith.constant 2 : i32
    %136 = vector.broadcast %c2_i32_61 : i32 to vector<6x1xi32>
    %137 = arith.cmpi sge, %56, %136 : vector<6x1xi32>
    %c4_i32_62 = arith.constant 4 : i32
    %138 = vector.broadcast %c4_i32_62 : i32 to vector<6x1xi32>
    %139 = arith.cmpi slt, %56, %138 : vector<6x1xi32>
    %140 = arith.andi %137, %139 : vector<6x1xi1>
    %cst_63 = arith.constant 0.000000e+00 : f32
    %141 = vector.broadcast %cst_63 : f32 to vector<6x1xf32>
    %142 = arith.select %140, %116, %141 : vector<6x1xi1>, vector<6x1xf32>
    %143 = vector.shape_cast %142 : vector<6x1xf32> to vector<1x6x1xf32>
    %cst_64 = arith.constant dense<0.000000e+00> : vector<1xf32>
    %144 = vector.multi_reduction <add>, %143, %cst_64 [1, 2] : vector<1x6x1xf32> to vector<1xf32>
    %145 = vector.shape_cast %144 : vector<1xf32> to vector<1x1x1xf32>
    %146 = vector.extract %145[0, 0, 0] : f32 from vector<1x1x1xf32>
    %cst_65 = arith.constant 1.280000e+02 : f32
    %147 = arith.divf %146, %cst_65 : f32
    %cst_66 = arith.constant 9.99999974E-6 : f32
    %148 = arith.addf %147, %cst_66 : f32
    %149 = math.rsqrt %148 : f32
    %cst_67 = arith.constant 0.000000e+00 : f32
    %150 = vector.broadcast %149 : f32 to vector<6x1xf32>
    %151 = vector.broadcast %cst_67 : f32 to vector<6x1xf32>
    %152 = arith.select %140, %150, %151 : vector<6x1xi1>, vector<6x1xf32>
    %153 = arith.addf %135, %152 : vector<6x1xf32>
    %c4_i32_68 = arith.constant 4 : i32
    %154 = vector.broadcast %c4_i32_68 : i32 to vector<6x1xi32>
    %155 = arith.cmpi sge, %56, %154 : vector<6x1xi32>
    %c6_i32_69 = arith.constant 6 : i32
    %156 = vector.broadcast %c6_i32_69 : i32 to vector<6x1xi32>
    %157 = arith.cmpi slt, %56, %156 : vector<6x1xi32>
    %158 = arith.andi %155, %157 : vector<6x1xi1>
    %cst_70 = arith.constant 0.000000e+00 : f32
    %159 = vector.broadcast %cst_70 : f32 to vector<6x1xf32>
    %160 = arith.select %158, %116, %159 : vector<6x1xi1>, vector<6x1xf32>
    %161 = vector.shape_cast %160 : vector<6x1xf32> to vector<1x6x1xf32>
    %cst_71 = arith.constant dense<0.000000e+00> : vector<1xf32>
    %162 = vector.multi_reduction <add>, %161, %cst_71 [1, 2] : vector<1x6x1xf32> to vector<1xf32>
    %163 = vector.shape_cast %162 : vector<1xf32> to vector<1x1x1xf32>
    %164 = vector.extract %163[0, 0, 0] : f32 from vector<1x1x1xf32>
    %cst_72 = arith.constant 1.280000e+02 : f32
    %165 = arith.divf %164, %cst_72 : f32
    %cst_73 = arith.constant 9.99999974E-6 : f32
    %166 = arith.addf %165, %cst_73 : f32
    %167 = math.rsqrt %166 : f32
    %cst_74 = arith.constant 0.000000e+00 : f32
    %168 = vector.broadcast %167 : f32 to vector<6x1xf32>
    %169 = vector.broadcast %cst_74 : f32 to vector<6x1xf32>
    %170 = arith.select %158, %168, %169 : vector<6x1xi1>, vector<6x1xf32>
    %171 = arith.addf %153, %170 : vector<6x1xf32>
    %172 = vector.broadcast %109 : vector<6x1xf32> to vector<6x88xf32>
    %173 = arith.subf %55, %172 : vector<6x88xf32>
    %174 = vector.broadcast %171 : vector<6x1xf32> to vector<6x88xf32>
    %175 = arith.mulf %173, %174 : vector<6x88xf32>
    %176 = vector.broadcast %14 : vector<6x1xf32> to vector<6x88xf32>
    %177 = arith.mulf %175, %176 : vector<6x88xf32>
    %178 = vector.broadcast %16 : vector<6x1xf32> to vector<6x88xf32>
    %179 = arith.addf %177, %178 : vector<6x88xf32>
    %cst_75 = arith.constant 3.000000e+00 : f32
    %180 = vector.broadcast %cst_75 : f32 to vector<6x88xf32>
    %181 = arith.addf %179, %180 : vector<6x88xf32>
    %cst_76 = arith.constant 0.000000e+00 : f32
    %cst_77 = arith.constant 6.000000e+00 : f32
    %182 = vector.broadcast %cst_76 : f32 to vector<6x88xf32>
    %183 = arith.maximumf %182, %181 : vector<6x88xf32>
    %184 = vector.broadcast %cst_77 : f32 to vector<6x88xf32>
    %185 = arith.minimumf %184, %183 : vector<6x88xf32>
    %186 = arith.mulf %179, %185 : vector<6x88xf32>
    %cst_78 = arith.constant 0.166666672 : f32
    %187 = vector.broadcast %cst_78 : f32 to vector<6x88xf32>
    %188 = arith.mulf %186, %187 : vector<6x88xf32>
    %cst_79 = arith.constant 0.000000e+00 : f32
    %cst_80 = arith.constant 6.000000e+00 : f32
    %189 = vector.broadcast %cst_79 : f32 to vector<6x88xf32>
    %190 = arith.maximumf %189, %179 : vector<6x88xf32>
    %191 = vector.broadcast %cst_80 : f32 to vector<6x88xf32>
    %192 = arith.minimumf %191, %190 : vector<6x88xf32>
    %cst_81 = arith.constant 0.000000e+00 : f32
    %193 = vector.broadcast %cst_81 : f32 to vector<6x88xf32>
    %194 = arith.minimumf %179, %193 : vector<6x88xf32>
    %cst_82 = arith.constant 0.00999999977 : f32
    %195 = vector.broadcast %cst_82 : f32 to vector<6x88xf32>
    %196 = arith.mulf %195, %194 : vector<6x88xf32>
    %197 = arith.addf %192, %196 : vector<6x88xf32>
    %cst_83 = arith.constant -3.000000e+00 : f32
    %198 = vector.broadcast %cst_83 : f32 to vector<6x88xf32>
    %199 = arith.cmpf oge, %179, %198 : vector<6x88xf32>
    %cst_84 = arith.constant 3.000000e+00 : f32
    %200 = vector.broadcast %cst_84 : f32 to vector<6x88xf32>
    %201 = arith.cmpf ole, %179, %200 : vector<6x88xf32>
    %202 = arith.andi %199, %201 : vector<6x88xi1>
    %203 = arith.select %202, %188, %197 : vector<6x88xi1>, vector<6x88xf32>
    %204 = vector.broadcast %18 : vector<6x1xf32> to vector<6x88xf32>
    %205 = arith.mulf %203, %204 : vector<6x88xf32>
    %cst_85 = arith.constant dense<0.000000e+00> : vector<88xf32>
    %206 = vector.multi_reduction <add>, %205, %cst_85 [0] : vector<6x88xf32> to vector<88xf32>
    %207 = vector.shape_cast %206 : vector<88xf32> to vector<1x88xf32>
    %208 = arith.negf %207 : vector<1x88xf32>
    %209 = math.exp %208 : vector<1x88xf32>
    %cst_86 = arith.constant 1.000000e+00 : f32
    %210 = vector.broadcast %cst_86 : f32 to vector<1x88xf32>
    %211 = arith.addf %210, %209 : vector<1x88xf32>
    %212 = arith.divf %210, %211 : vector<1x88xf32>
    %213 = vector.broadcast %23 : vector<1x88xf32> to vector<6x88xf32>
    %214 = arith.mulf %203, %213 : vector<6x88xf32>
    %cst_87 = arith.constant dense<0.000000e+00> : vector<6xf32>
    %215 = vector.multi_reduction <add>, %214, %cst_87 [1] : vector<6x88xf32> to vector<6xf32>
    %216 = vector.shape_cast %215 : vector<6xf32> to vector<6x1xf32>
    %cst_88 = arith.constant 1.562500e-02 : f32
    %217 = vector.broadcast %cst_88 : f32 to vector<6x1xf32>
    %218 = arith.mulf %216, %217 : vector<6x1xf32>
    %219 = vector.broadcast %218 : vector<6x1xf32> to vector<6x2xf32>
    %220 = arith.mulf %20, %219 : vector<6x2xf32>
    %cst_89 = arith.constant dense<0.000000e+00> : vector<2xf32>
    %221 = vector.multi_reduction <add>, %220, %cst_89 [0] : vector<6x2xf32> to vector<2xf32>
    %222 = vector.shape_cast %221 : vector<2xf32> to vector<1x2xf32>
    %cst_90 = arith.constant 0.000000e+00 : f32
    %223 = vector.broadcast %cst_90 : f32 to vector<1x2xf32>
    %224 = arith.maximumf %222, %223 : vector<1x2xf32>
    %225 = vector.broadcast %224 : vector<1x2xf32> to vector<6x2xf32>
    %226 = arith.mulf %22, %225 : vector<6x2xf32>
    %cst_91 = arith.constant dense<0.000000e+00> : vector<6xf32>
    %227 = vector.multi_reduction <add>, %226, %cst_91 [1] : vector<6x2xf32> to vector<6xf32>
    %228 = vector.shape_cast %227 : vector<6xf32> to vector<6x1xf32>
    %cst_92 = arith.constant 3.000000e+00 : f32
    %229 = vector.broadcast %cst_92 : f32 to vector<6x1xf32>
    %230 = arith.addf %228, %229 : vector<6x1xf32>
    %cst_93 = arith.constant 0.000000e+00 : f32
    %cst_94 = arith.constant 6.000000e+00 : f32
    %231 = vector.broadcast %cst_93 : f32 to vector<6x1xf32>
    %232 = arith.maximumf %231, %230 : vector<6x1xf32>
    %233 = vector.broadcast %cst_94 : f32 to vector<6x1xf32>
    %234 = arith.minimumf %233, %232 : vector<6x1xf32>
    %cst_95 = arith.constant 0.166666672 : f32
    %235 = vector.broadcast %cst_95 : f32 to vector<6x1xf32>
    %236 = arith.mulf %234, %235 : vector<6x1xf32>
    %237 = vector.broadcast %236 : vector<6x1xf32> to vector<6x88xf32>
    %238 = vector.broadcast %212 : vector<1x88xf32> to vector<6x88xf32>
    %239 = arith.addf %237, %238 : vector<6x88xf32>
    %240 = arith.mulf %203, %239 : vector<6x88xf32>
    %c0_96 = arith.constant 0 : index
    %c0_97 = arith.constant 0 : index
    %c0_98 = arith.constant 0 : index
    %c0_99 = arith.constant 0 : index
    %241 = vector.load %arg7[%c0_96, %c0_97, %c0_98, %c0_99] : memref<1x1x6x88xf32, #tpu.memory_space<vmem>>, vector<1x1x6x88xf32>
    %242 = vector.shape_cast %241 : vector<1x1x6x88xf32> to vector<6x88xf32>
    %243 = vector.shape_cast %240 : vector<6x88xf32> to vector<1x1x6x88xf32>
    tpu.vector_store %arg7[%c0_96, %c0_97, %c0_98, %c0_99], %243 {strides = array<i32>} : memref<1x1x6x88xf32, #tpu.memory_space<vmem>>, vector<1x1x6x88xf32>,
    return
  }
  func.func @transform_0(%arg0: i32, %arg1: i32) -> (i32, i32, i32, i32) {
    %c0_i32 = arith.constant 0 : i32
    %c0_i32_0 = arith.constant 0 : i32
    %c0_i32_1 = arith.constant 0 : i32
    %c0_i32_2 = arith.constant 0 : i32
    return %c0_i32, %arg0, %c0_i32_0, %c0_i32_1 : i32, i32, i32, i32
  }
  func.func @transform_1(%arg0: i32, %arg1: i32) -> (i32, i32, i32, i32) {
    %c0_i32 = arith.constant 0 : i32
    %c0_i32_0 = arith.constant 0 : i32
    %c0_i32_1 = arith.constant 0 : i32
    %c0_i32_2 = arith.constant 0 : i32
    return %arg1, %c0_i32, %c0_i32_0, %c0_i32_1 : i32, i32, i32, i32
  }
  func.func @transform_2(%arg0: i32, %arg1: i32) -> (i32, i32, i32) {
    %c0_i32 = arith.constant 0 : i32
    %c0_i32_0 = arith.constant 0 : i32
    %c0_i32_1 = arith.constant 0 : i32
    return %arg1, %c0_i32, %c0_i32_0 : i32, i32, i32
  }
  func.func @transform_3(%arg0: i32, %arg1: i32) -> (i32, i32, i32) {
    %c0_i32 = arith.constant 0 : i32
    %c0_i32_0 = arith.constant 0 : i32
    %c0_i32_1 = arith.constant 0 : i32
    return %arg1, %c0_i32, %c0_i32_0 : i32, i32, i32
  }
  func.func @transform_4(%arg0: i32, %arg1: i32) -> (i32, i32) {
    %c0_i32 = arith.constant 0 : i32
    %c0_i32_0 = arith.constant 0 : i32
    %c0_i32_1 = arith.constant 0 : i32
    return %c0_i32, %c0_i32_0 : i32, i32
  }
  func.func @transform_5(%arg0: i32, %arg1: i32) -> (i32, i32, i32, i32) {
    %c0_i32 = arith.constant 0 : i32
    %c0_i32_0 = arith.constant 0 : i32
    %c0_i32_1 = arith.constant 0 : i32
    return %arg1, %arg0, %c0_i32, %c0_i32_0 : i32, i32, i32, i32
  }
}

</mosaic_0001>

<bundles_post_ra>
// kernel: tpu_custom_call.1
= control target key start
LH: loop header
LB: loop body
LE: loop exit
PB: predicated region body
PF: predicated region fallthrough
CT: control target
= control target key end

     0   :  { %s1674_s0 = inlined_call_operand.vmem [shape: f32[4,2,6,132], index: 0, kind: input, shape index: {}]   ;;  %s1675_s1 = inlined_call_operand.vmem [shape: f32[3,9,6,1], index: 1, kind: input, shape index: {}]   ;;  %s1676_s2 = inlined_call_operand.vmem [shape: f32[3,6,9], index: 2, kind: input, shape index: {}]   ;;  %s1677_s3 = inlined_call_operand.vmem [shape: f32[3,6,6], index: 3, kind: input, shape index: {}]   ;;  %s1678_s4 = inlined_call_operand.vmem [shape: f32[1,88], index: 4, kind: input, shape index: {}]   ;;  %s1679_s5 = inlined_call_operand.vmem [shape: f32[3,2,6,88], index: 5, kind: output, shape index: {}]  }
   0x1   :  { %1681 = sst [smem:[#allocation6_spill]] %s1674_s0 }
   0x2   :  { %s1450_s18 = smov 0   ;;  %s1452_s19 = smov 0  }
   0x3   :  { %s1454_s20 = smov 0   ;;  %s1456_s21 = smov 0  }
   0x4   :  { %s1458_s22 = smov 0   ;;  %s1460_s23 = smov 0  }
   0x5   :  { %s1462_s24 = smov 0  }
   0x6 LB: > { %s24_s25 = sadd.s32 1, %s1379_s22  ;;  %s27_s26 = sadd.s32 1, %s1383_s23  ;;  %s1387_s24 = sphi %s1462_s24, %s15_s24   ;;  %s1383_s23 = sphi %s1460_s23, %s1696_s23   ;;  %s1379_s22 = sphi %s1458_s22, %s1695_s22   ;;  %s1375_s21 = sphi %s1456_s21, %s1694_s21   ;;  %s1371_s20 = sphi %s1454_s20, %s1693_s20   ;;  %s1367_s19 = sphi %s1452_s19, %s1692_s19   ;;  %s1363_s18 = sphi %s1450_s18, %s1691_s18  }
   0x7   : > { %p25_p0 = scmp.ge.s32.totalorder %s24_s25, 3  ;;  %p41_p1 = scmp.ne.s32.totalorder %s1367_s19, %s1363_s18 }
   0x8   : > { %p42_p2 = scmp.eq.s32.totalorder %s1387_s24, 0  ;;  %s34_s28 = sadd.s32 1, %s1367_s19 }
   0x9   : > { %s1698_s25 = smov (%p25_p0, %s24_s25), 0  ;;  %s1700_s26 = smov (!%p25_p0, %s27_s26), %s1383_s23 }
   0xa   : > { %1682 = sst [smem:[#allocation4_spill]] %s1698_s25  ;;  %p43_p3 = por %p42_p2, %p41_p1 }
   0xb   : > { %p29_p4 = scmp.ge.s32.totalorder %s1700_s26, 2  ;;  %p1147_p6 = scmp.ge.s32.totalorder %s1387_s24, 6 }
   0xd   : > { %s1702_s26 = smov (%p29_p4, %s1700_s26), 0  ;;  %197 = sbr.rel (%p1147_p6) target bundleno = 32 (0x20), region = 20 }
   0xe   : > { %1683 = sst [smem:[#allocation5_spill]] %s1702_s26  ;;  %s31_s27 = ssub.s32 %s1383_s23, %s1702_s26 }
   0xf   : > { %p32_p5 = scmp.eq.s32.totalorder %s31_s27, 0 }
  0x11   : > { %s1499_s29 = scalar_select %p32_p5, %s1367_s19, %s34_s28  }
  0x12   : > { %200 = sbr.rel (!%p43_p3) target bundleno = 32 (0x20), region = 24  ;;  %s202_s30 = sand.u32 (%p43_p3), 1, %s1367_s19  }
  0x13   : > { %s1198_s6 = sshll.u32 (%p43_p3), %s1383_s23, 4  ;;  %s1148_s7 = sshll.u32 (%p43_p3), %s202_s30, 6 }
  0x14   : > { %s1684_s0 = sld [smem:[#allocation6_spill]] (%p43_p3)  ;;  %s204_s11 = scalar_lea.vmem (%p43_p3), [#allocation3], %s1148_s7 }
  0x1a   : > { %s207_s10 = scalar_lea.vmem %s1684_s0, %s1198_s6 }
  0x1b   : > { %v220_v0 = vld [vmem:[%s207_s10] sm:$0xff]  ;;  %v222_v1 = vld [vmem:[%s207_s10 + $0x8] sm:$0xff] }
  0x1c   : > { %v224_v2 = vld [vmem:[%s207_s10 + $0x20] sm:$0xff]  ;;  %221 = vst [vmem:[%s204_s11] sm:$0xff] %v220_v0  ;;  %223 = vst [vmem:[%s204_s11 + $0x8] sm:$0xff] %v222_v1  ;;  %v226_v3 = vld [vmem:[%s207_s10 + $0x28] sm:$0xff] }
  0x1d   : > { %225 = vst [vmem:[%s204_s11 + $0x10] sm:$0xff] %v224_v2  ;;  %v228_v4 = vld [vmem:[%s207_s10 + $0x40] sm:$0xff]  ;;  %v230_v5 = vld [vmem:[%s207_s10 + $0x48] sm:$0xff]  ;;  %227 = vst [vmem:[%s204_s11 + $0x18] sm:$0xff] %v226_v3 }
  0x1e   : > { %229 = vst [vmem:[%s204_s11 + $0x20] sm:$0xff] %v228_v4  ;;  %231 = vst [vmem:[%s204_s11 + $0x28] sm:$0xff] %v230_v5  ;;  %v232_v6 = vld [vmem:[%s207_s10 + $0x60] sm:$0xff]  ;;  %v234_v7 = vld [vmem:[%s207_s10 + $0x68] sm:$0xff] }
  0x1f   : > { %233 = vst [vmem:[%s204_s11 + $0x30] sm:$0xff] %v232_v6  ;;  %235 = vst [vmem:[%s204_s11 + $0x38] sm:$0xff] %v234_v7 }
  0x20 PF: > { %p1151_p7 = scmp.ge.s32.totalorder %s1387_s24, 1  ;;  %p262_p8 = scmp.lt.s32.totalorder %s1387_s24, 7 }
  0x22   : > { %p263_p9 = pnand %p1151_p7, %p262_p8 }
  0x23   : > { %s269_s12 = sand.u32 (!%p263_p9), 1, %s1363_s18   ;;  %p312_p10 = scmp.lt.s32.totalorder (!%p263_p9), %s1371_s20, 2 }
  0x24   : > { %266 = sbr.rel (%p263_p9) target bundleno = 2773 (0xad5), region = 59  ;;  %s1152_s13 = sshll.u32 (!%p263_p9), %s269_s12, 6 }
  0x25   : > { %p327_p11 = scmp.lt.s32.totalorder (!%p263_p9), %s1375_s21, 1  ;;  %s1534_s17 = scalar_lea.vmem (!%p263_p9), [#allocation3], %s1152_s13 }
  0x26   : > { %p1158_p12 = scmp.ne.s32.totalorder (!%p263_p9), %s1371_s20, 0 }
  0x29   : > { %s313_s14 = scalar_select %p312_p10, %s1371_s20, 2 }
  0x2a   : > { %s1704_s21 = smov (!%p327_p11, %s1375_s21), 1  ;;  %s1390_s0 = smov (!%p1158_p12), 127  }
  0x2b   : > { %s1206_s15 = smul.u32 72, %s313_s14  ;;  %s1154_s16 = sshll.u32 %s313_s14, 3 }
  0x2c   : > { %s1517_s28 = scalar_lea.vmem %s1676_s2, %s1154_s16  ;;  %s1522_s7 = scalar_lea.vmem %s1677_s3, %s1154_s16 }
  0x2d   : > { %s1527_s18 = scalar_lea.vmem %s1675_s1, %s1206_s15  ;;  %s1156_s10 = sshll.u32 %s313_s14, 1 }
  0x2e   : > { %s330_s11 = sadd.s32 %s1156_s10, %s1704_s21  ;;  %336 = sbr.rel (%p1158_p12) target bundleno = 313 (0x139), region = 67 }
  0x2f   : > { %s1157_s12 = sshll.u32 %s330_s11, 3  ;;  %s1391_s21 = smov (!%p1158_p12), 117  }
  0x30   : > { %s1532_s25 = scalar_lea.vmem %s1679_s5, %s1157_s12  ;;  %s1392_s26 = smov (!%p1158_p12), 125  }
  0x31   : > { %s1393_s13 = smov (!%p1158_p12), 114   ;;  %s1394_s14 = smov (!%p1158_p12), 116  }
  0x32   : > { %s1395_s15 = smov (!%p1158_p12), 94   ;;  %s1396_s16 = smov (!%p1158_p12), 95  }
  0x33   : > { %v1163_v8 = vld [vmem:[%s1527_s18 + $0x18] sm:$0x3f]  ;;  %v1160_v9 = vld [vmem:[%s1527_s18 + $0x8] sm:$0x3f]  ;;  %v1389_v10 = vmov 0   ;;  %s1397_s27 = smov 92  }
  0x34   : > { %1313 = vset.pattern.permute.xlu1 %v1389_v10  ;;  %1312 = vset.pattern.permute.xlu0 %v1389_v10  ;;  %v1165_v11 = vld [vmem:[%s1527_s18 + $0x20] sm:$0x3f]  ;;  %v1161_v12 = vld [vmem:[%s1527_s18 + $0x10] sm:$0x3f]  ;;  %v1166_v14 = vld [vmem:[%s1527_s18 + $0x28] sm:$0x3f] }
  0x35   : > { %380 = vperm.xlu1 %1313, %v1163_v8   ;;  %352 = vperm.xlu0 %1312, %v1160_v9   ;;  %v1167_v13 = vld [vmem:[%s1527_s18 + $0x30] sm:$0x3f]  ;;  %v1169_v15 = vld [vmem:[%s1527_s18 + $0x40] sm:$0x3f]  ;;  %v1168_v16 = vld [vmem:[%s1527_s18 + $0x38] sm:$0x3f] }
  0x36   : > { %v338_v17 = vld [vmem:[%s1527_s18] sm:$0x3f]  ;;  %v1159_v18 = vld [vmem:[%s1534_s17 + $0x10] sm:$0x3f]  ;;  %v1162_v19 = vld [vmem:[%s1534_s17 + $0x20] sm:$0x3f] }
  0x37   : > { %v337_v23 = vld [vmem:[%s1534_s17] sm:$0x3f]  ;;  %v1164_v28 = vld [vmem:[%s1534_s17 + $0x30] sm:$0x3f]  ;;  %vm456_vm0 = vcmask 717824  }
  0x39   : > { %395 = vperm.xlu1 %1313, %v1165_v11   ;;  %365 = vperm.xlu0 %1312, %v1161_v12  }
  0x3d   : > { %421 = vperm.xlu1 %1313, %v1167_v13   ;;  %408 = vperm.xlu0 %1312, %v1166_v14  }
  0x41   : > { %447 = vperm.xlu1 %1313, %v1169_v15   ;;  %434 = vperm.xlu0 %1312, %v1168_v16  }
  0x45   : > { %341 = vperm.xlu0 %1312, %v338_v17  }
  0xb0   : > { %v381_v20 = vpop.permute.xlu1 %380  ;;  %v353_v21 = vpop.permute.xlu0 %352 }
  0xb1   : > { %v355_v22 = vmul.f32 %v1159_v18, %v353_v21  ;;  %v383_v24 = vmul.f32 %v1162_v19, %v381_v20 }
  0xb3   : > { %357 = vrot.lane.b32.xlu1 %v355_v22, %s1390_s0 }
  0xb4   : > { %v396_v25 = vpop.permute.xlu1 %395  ;;  %v366_v26 = vpop.permute.xlu0 %365 }
  0xb5   : > { %v368_v27 = vmul.f32 %v366_v26, %v337_v23  ;;  %v398_v31 = vmul.f32 %v1164_v28, %v396_v25 }
  0xb7   : > { %385 = vrot.lane.b32.xlu1 %v383_v24, %s1391_s21  ;;  %370 = vrot.lane.b32.xlu0 %v368_v27, %s1392_s26 }
  0xb8   : > { %v422_v29 = vpop.permute.xlu1 %421  ;;  %v409_v30 = vpop.permute.xlu0 %408 }
  0xb9   : > { %v411_v32 = vmul.f32 %v1162_v19, %v409_v30  ;;  %v424_v34 = vmul.f32 %v422_v29, %v337_v23 }
  0xbb   : > { %413 = vrot.lane.b32.xlu1 %v411_v32, %s1393_s13  ;;  %400 = vrot.lane.b32.xlu0 %v398_v31, %s1394_s14 }
  0xbc   : > { %v435_v33 = vpop.permute.xlu0 %434  ;;  %v448_v36 = vpop.permute.xlu1 %447 }
  0xbd   : > { %v437_v35 = vmul.f32 %v1159_v18, %v435_v33  ;;  %v450_v37 = vmul.f32 %v448_v36, %v337_v23 }
  0xbf   : > { %439 = vrot.lane.b32.xlu1 %v437_v35, %s1395_s15  ;;  %426 = vrot.lane.b32.xlu0 %v424_v34, %s1396_s16 }
  0xc0   : > { %v342_v38 = vpop.permute.xlu0 %341 }
  0xc1   : > { %v344_v40 = vmul.f32 %v342_v38, %v337_v23 }
  0xc3   : > { %452 = vrot.lane.b32.xlu0 %v450_v37, %s1397_s27 }
 0x125   : > { %v358_v39 = vpop.permute.xlu1 %357 }
 0x126   : > { %v360_v41 = vadd.f32 %v358_v39, %v344_v40 }
 0x129   : > { %v386_v42 = vpop.permute.xlu1 %385  ;;  %v371_v43 = vpop.permute.xlu0 %370 }
 0x12a   : > { %v373_v44 = vadd.f32 %v371_v43, %v360_v41 }
 0x12c   : > { %v388_v45 = vadd.f32 %v386_v42, %v373_v44 }
 0x12d   : > { %v414_v46 = vpop.permute.xlu1 %413  ;;  %v401_v47 = vpop.permute.xlu0 %400 }
 0x12e   : > { %v403_v48 = vadd.f32 %v401_v47, %v388_v45 }
 0x130   : > { %v416_v49 = vadd.f32 %v414_v46, %v403_v48 }
 0x131   : > { %v427_v50 = vpop.permute.xlu0 %426  ;;  %v440_v52 = vpop.permute.xlu1 %439 }
 0x132   : > { %v429_v51 = vadd.f32 %v427_v50, %v416_v49 }
 0x134   : > { %v442_v53 = vadd.f32 %v440_v52, %v429_v51 }
 0x135   : > { %v453_v54 = vpop.permute.xlu0 %452 }
 0x136   : > { %v455_v55 = vadd.f32 %v453_v54, %v442_v53 }
 0x138   : > { %457 = vst.msk [vmem:[#allocation2] sm:$0x3f] %vm456_vm0, %v455_v55 }
 0x139 PF: > { %p1170_p13 = scmp.ne.s32.totalorder %s1371_s20, 1 }
 0x13a   : > { %s1399_s30 = smov (!%p1170_p13), 127   ;;  %s1400_s6 = smov (!%p1170_p13), 126  }
 0x13b   : > { %461 = sbr.rel (%p1170_p13) target bundleno = 582 (0x246), region = 71  ;;  %s1401_s8 = smov (!%p1170_p13), 117  }
 0x13c   : > { %s1402_s9 = smov (!%p1170_p13), 116   ;;  %s1403_s10 = smov (!%p1170_p13), 115  }
 0x13d   : > { %s1404_s11 = smov (!%p1170_p13), 106   ;;  %s1405_s12 = smov (!%p1170_p13), 105  }
 0x13e   : > { %s1406_s0 = smov (!%p1170_p13), 104  }
 0x140   : > { %v1174_v56 = vld [vmem:[%s1527_s18 + $0x18] sm:$0x3f]  ;;  %v1172_v57 = vld [vmem:[%s1527_s18 + $0x8] sm:$0x3f]  ;;  %v1398_v58 = vmov 0   ;;  %vm576_vm1 = vcmask 717824  }
 0x141   : > { %1315 = vset.pattern.permute.xlu1 %v1398_v58  ;;  %1314 = vset.pattern.permute.xlu0 %v1398_v58  ;;  %v1175_v59 = vld [vmem:[%s1527_s18 + $0x20] sm:$0x3f]  ;;  %v1173_v60 = vld [vmem:[%s1527_s18 + $0x10] sm:$0x3f]  ;;  %v1176_v62 = vld [vmem:[%s1527_s18 + $0x28] sm:$0x3f] }
 0x142   : > { %502 = vperm.xlu1 %1315, %v1174_v56   ;;  %476 = vperm.xlu0 %1314, %v1172_v57   ;;  %v1177_v61 = vld [vmem:[%s1527_s18 + $0x30] sm:$0x3f]  ;;  %v1179_v63 = vld [vmem:[%s1527_s18 + $0x40] sm:$0x3f]  ;;  %v1178_v0 = vld [vmem:[%s1527_s18 + $0x38] sm:$0x3f] }
 0x143   : > { %v464_v1 = vld [vmem:[%s1527_s18] sm:$0x3f]  ;;  %v1171_v2 = vld [vmem:[%s1534_s17 + $0x30] sm:$0x3f] }
 0x146   : > { %515 = vperm.xlu1 %1315, %v1175_v59   ;;  %489 = vperm.xlu0 %1314, %v1173_v60  }
 0x14a   : > { %541 = vperm.xlu1 %1315, %v1177_v61   ;;  %528 = vperm.xlu0 %1314, %v1176_v62  }
 0x14e   : > { %567 = vperm.xlu1 %1315, %v1179_v63   ;;  %554 = vperm.xlu0 %1314, %v1178_v0  }
 0x152   : > { %467 = vperm.xlu0 %1314, %v464_v1  }
 0x1bd   : > { %v503_v3 = vpop.permute.xlu1 %502  ;;  %v477_v4 = vpop.permute.xlu0 %476 }
 0x1be   : > { %v479_v5 = vmul.f32 %v1171_v2, %v477_v4  ;;  %v505_v6 = vmul.f32 %v1171_v2, %v503_v3 }
 0x1c0   : > { %481 = vrot.lane.b32.xlu1 %v479_v5, %s1399_s30 }
 0x1c1   : > { %v516_v7 = vpop.permute.xlu1 %515  ;;  %v490_v8 = vpop.permute.xlu0 %489 }
 0x1c2   : > { %v492_v9 = vmul.f32 %v1171_v2, %v490_v8  ;;  %v518_v12 = vmul.f32 %v1171_v2, %v516_v7 }
 0x1c4   : > { %494 = vrot.lane.b32.xlu0 %v492_v9, %s1400_s6  ;;  %507 = vrot.lane.b32.xlu1 %v505_v6, %s1401_s8 }
 0x1c5   : > { %v542_v10 = vpop.permute.xlu1 %541  ;;  %v529_v11 = vpop.permute.xlu0 %528 }
 0x1c6   : > { %v531_v13 = vmul.f32 %v1171_v2, %v529_v11  ;;  %v544_v15 = vmul.f32 %v1171_v2, %v542_v10 }
 0x1c8   : > { %520 = vrot.lane.b32.xlu0 %v518_v12, %s1402_s9  ;;  %533 = vrot.lane.b32.xlu1 %v531_v13, %s1403_s10 }
 0x1c9   : > { %v555_v14 = vpop.permute.xlu0 %554  ;;  %v568_v17 = vpop.permute.xlu1 %567 }
 0x1ca   : > { %v557_v16 = vmul.f32 %v1171_v2, %v555_v14  ;;  %v570_v18 = vmul.f32 %v1171_v2, %v568_v17 }
 0x1cc   : > { %546 = vrot.lane.b32.xlu0 %v544_v15, %s1404_s11  ;;  %559 = vrot.lane.b32.xlu1 %v557_v16, %s1405_s12 }
 0x1cd   : > { %v468_v19 = vpop.permute.xlu0 %467 }
 0x1ce   : > { %v470_v21 = vmul.f32 %v1171_v2, %v468_v19 }
 0x1d0   : > { %572 = vrot.lane.b32.xlu0 %v570_v18, %s1406_s0 }
 0x232   : > { %v482_v20 = vpop.permute.xlu1 %481 }
 0x233   : > { %v484_v22 = vadd.f32 %v482_v20, %v470_v21 }
 0x236   : > { %v495_v23 = vpop.permute.xlu0 %494  ;;  %v508_v24 = vpop.permute.xlu1 %507 }
 0x237   : > { %v497_v25 = vadd.f32 %v495_v23, %v484_v22 }
 0x239   : > { %v510_v26 = vadd.f32 %v508_v24, %v497_v25 }
 0x23a   : > { %v521_v27 = vpop.permute.xlu0 %520  ;;  %v534_v28 = vpop.permute.xlu1 %533 }
 0x23b   : > { %v523_v29 = vadd.f32 %v521_v27, %v510_v26 }
 0x23d   : > { %v536_v30 = vadd.f32 %v534_v28, %v523_v29 }
 0x23e   : > { %v547_v31 = vpop.permute.xlu0 %546  ;;  %v560_v33 = vpop.permute.xlu1 %559 }
 0x23f   : > { %v549_v32 = vadd.f32 %v547_v31, %v536_v30 }
 0x241   : > { %v562_v34 = vadd.f32 %v560_v33, %v549_v32 }
 0x242   : > { %v573_v35 = vpop.permute.xlu0 %572 }
 0x243   : > { %v575_v36 = vadd.f32 %v573_v35, %v562_v34 }
 0x245   : > { %577 = vst.msk [vmem:[#allocation2] sm:$0x3f] %vm576_vm1, %v575_v36 }
 0x246 PF: > { %p1180_p0 = scmp.ne.s32.totalorder %s1371_s20, 2 }
 0x247   : > { %s1408_s20 = smov (!%p1180_p0), 127   ;;  %s1409_s21 = smov (!%p1180_p0), 117  }
 0x248   : > { %581 = sbr.rel (%p1180_p0) target bundleno = 962 (0x3c2), region = 75 }
 0x24d   : > { %v1189_v37 = vld [vmem:[%s1527_s18 + $0x30] sm:$0x3f]  ;;  %v1407_v39 = vmov 0   ;;  %v1190_v40 = vld [vmem:[%s1527_s18 + $0x38] sm:$0x3f]  ;;  %vm693_vm2 = vcmask 717824  }
 0x24e   : > { %v1183_v38 = vld [vmem:[%s1527_s18 + $0x10] sm:$0x3f]  ;;  %1317 = vset.pattern.permute.xlu1 %v1407_v39  ;;  %1316 = vset.pattern.permute.xlu0 %v1407_v39  ;;  %v1188_v41 = vld [vmem:[%s1527_s18 + $0x28] sm:$0x3f]  ;;  %v1191_v42 = vld [vmem:[%s1527_s18 + $0x40] sm:$0x3f] }
 0x24f   : > { %654 = vperm.xlu1 %1317, %v1189_v37   ;;  %606 = vperm.xlu0 %1316, %v1183_v38   ;;  %v583_v43 = vld [vmem:[%s1527_s18] sm:$0x3f]  ;;  %v1182_v44 = vld [vmem:[%s1527_s18 + $0x8] sm:$0x3f]  ;;  %v1185_v45 = vld [vmem:[%s1527_s18 + $0x18] sm:$0x3f] }
 0x250   : > { %v1187_v46 = vld [vmem:[%s1527_s18 + $0x20] sm:$0x3f]  ;;  %v582_v47 = vld [vmem:[%s1534_s17] sm:$0x3f]  ;;  %v1181_v56 = vld [vmem:[%s1534_s17 + $0x10] sm:$0x3f] }
 0x251   : > { %v1184_v51 = vld [vmem:[%s1534_s17 + $0x20] sm:$0x3f]  ;;  %s1410_s18 = smov 116   ;;  %v1186_v2 = vld [vmem:[%s1534_s17 + $0x30] sm:$0x3f] }
 0x253   : > { %667 = vperm.xlu1 %1317, %v1190_v40   ;;  %641 = vperm.xlu0 %1316, %v1188_v41  }
 0x257   : > { %680 = vperm.xlu0 %1316, %v1191_v42   ;;  %586 = vperm.xlu1 %1317, %v583_v43  }
 0x25b   : > { %597 = vperm.xlu0 %1316, %v1182_v44   ;;  %621 = vperm.xlu1 %1317, %v1185_v45  }
 0x25f   : > { %632 = vperm.xlu0 %1316, %v1187_v46  }
 0x2ca   : > { %v655_v48 = vpop.permute.xlu1 %654  ;;  %v607_v49 = vpop.permute.xlu0 %606 }
 0x2cb   : > { %v609_v50 = vmul.f32 %v607_v49, %v582_v47  ;;  %v657_v52 = vmul.f32 %v655_v48, %v582_v47 }
 0x2cd   : > { %611 = vrot.lane.b32.xlu1 %v609_v50, %s1408_s20 }
 0x2ce   : > { %v668_v53 = vpop.permute.xlu1 %667  ;;  %v642_v54 = vpop.permute.xlu0 %641 }
 0x2cf   : > { %v644_v55 = vmul.f32 %v1184_v51, %v642_v54  ;;  %v670_v58 = vmul.f32 %v1181_v56, %v668_v53 }
 0x2d1   : > { %646 = vrot.lane.b32.xlu0 %v644_v55, %s1408_s20  ;;  %659 = vrot.lane.b32.xlu1 %v657_v52, %s1409_s21 }
 0x2d2   : > { %v681_v57 = vpop.permute.xlu0 %680  ;;  %v587_v60 = vpop.permute.xlu1 %586 }
 0x2d3   : > { %v683_v59 = vmul.f32 %v681_v57, %v582_v47  ;;  %v589_v62 = vmul.f32 %v587_v60, %v582_v47 }
 0x2d5   : > { %672 = vrot.lane.b32.xlu0 %v670_v58, %s1409_s21  ;;  %685 = vrot.lane.b32.xlu1 %v683_v59, %s1410_s18 }
 0x2d6   : > { %v598_v61 = vpop.permute.xlu0 %597  ;;  %v622_v1 = vpop.permute.xlu1 %621 }
 0x2d7   : > { %v600_v63 = vmul.f32 %v1181_v56, %v598_v61  ;;  %v624_v5 = vmul.f32 %v1184_v51, %v622_v1 }
 0x2d9   : > { %v601_v0 = vadd.f32 %v600_v63, %v589_v62 }
 0x2da   : > { %v633_v3 = vpop.permute.xlu0 %632 }
 0x2db   : > { %v635_v7 = vmul.f32 %v1186_v2, %v633_v3 }
 0x33f   : > { %v612_v4 = vpop.permute.xlu1 %611 }
 0x340   : > { %v614_v6 = vadd.f32 %v612_v4, %v601_v0 }
 0x342   : > { %v625_v8 = vadd.f32 %v624_v5, %v614_v6 }
 0x343   : > { %v647_v9 = vpop.permute.xlu0 %646  ;;  %v660_v11 = vpop.permute.xlu1 %659 }
 0x344   : > { %v636_v10 = vadd.f32 %v635_v7, %v625_v8 }
 0x346   : > { %v649_v12 = vadd.f32 %v647_v9, %v636_v10 }
 0x347   : > { %v673_v14 = vpop.permute.xlu0 %672  ;;  %v686_v16 = vpop.permute.xlu1 %685 }
 0x348   : > { %v662_v13 = vadd.f32 %v660_v11, %v649_v12 }
 0x34a   : > { %v675_v15 = vadd.f32 %v673_v14, %v662_v13 }
 0x34c   : > { %v688_v17 = vadd.f32 %v686_v16, %v675_v15 }
 0x34e   : > { %690 = vrot.lane.b32.xlu0 %v688_v17, %s1410_s18 }
 0x3c0   : > { %v691_v18 = vpop.permute.xlu0 %690 }
 0x3c1   : > { %694 = vst.msk [vmem:[#allocation2] sm:$0x3f] %vm693_vm2, %v691_v18 }
 0x3c2 PF: > { %v1576_v19 = vld [vmem:[%s1517_s28] sm:$0x3f]  ;;  %v1411_v20 = vmov 0   ;;  %v1412_v21 = vmov 0.0   ;;  %vm1413_vm3 = vmmov 0   ;;  %v1414_v22 = vmov 1  }
 0x3c3   : > { %1318 = vset.pattern.permute.xlu0 %v1411_v20  ;;  %1201 = vmatprep.subr.mxu0 %v1412_v21  ;;  %vm727_vm6 = vcmask 1045504   ;;  %v718_v36 = vld [vmem:[%s1522_s7] sm:$0x3f]  ;;  %vm723_vm8 = vcmask 48128   ;;  %vm810_vm9 = vcmask 717824   ;;  %v801_v45 = vlaneseq  ;;  %s1418_s28 = smov 2  }
 0x3c4   : > { %700 = vperm.xlu0 %1318, %v1576_v19   ;;  %1203 = vmatprep.mubr.msk.f32.mxu0 %vm1413_vm3, %v1412_v21  ;;  %v1584_v40 = vld [vmem:[%s1678_s4] ss:$0 sm:$0xff]  ;;  %vm818_vm0 = vcmask 5120   ;;  %s1419_s17 = smov 121  }
 0x3c5   : > { %v1591_v46 = vshrl.u32 %v801_v45, 7 }
 0x3c7   : > { %vm855_vm10 = vcmp.ge.s32.totalorder %v1591_v46, 4  ;;  %vm856_vm11 = vcmp.lt.s32.totalorder %v1591_v46, 6  ;;  %vm835_vm12 = vcmp.ge.s32.totalorder %v1591_v46, 2  ;;  %vm836_vm13 = vcmp.lt.s32.totalorder %v1591_v46, 4 }
 0x3c8   : > { %1319 = vset.pattern.permute.xlu0 %v1414_v22  ;;  %v697_v23 = vld [vmem:[#allocation2] sm:$0x3f]  ;;  %vm1597_vm14 = vmand %vm855_vm10, %vm856_vm11  ;;  %vm815_vm15 = vcmp.lt.s32.totalorder %v1591_v46, 2 }
 0x3c9   : > { %720 = vperm.xlu0 %1319, %v1576_v19   ;;  %vm1602_vm1 = vmand %vm835_vm12, %vm836_vm13 }
 0x43f   : > { %v701_v24 = vpop.permute.xlu0 %700 }
 0x440   : > { %v703_v25 = vadd.f32 %v701_v24, %v697_v23 }
 0x442   : > { %v704_v26 = vadd.f32 3.0, %v703_v25  ;;  %v709_v27 = vmax.f32 %v703_v25, 0.0  ;;  %v711_v28 = vmin.f32 %v703_v25, 0.0  ;;  %vm714_vm4 = vcmp.ge.f32.partialorder %v703_v25, -3.0 }
 0x443   : > { %vm715_vm5 = vcmp.le.f32.partialorder %v703_v25, 3.0 }
 0x444   : > { %v705_v29 = vmax.f32 %v704_v26, 0.0  ;;  %v710_v31 = vmin.f32 %v709_v27, 6.0  ;;  %v712_v32 = vmul.f32 0.01, %v711_v28  ;;  %vm716_vm7 = vmand %vm714_vm4, %vm715_vm5  ;;  %v721_v38 = vpop.permute.xlu0 %720  ;;  %vm993_vm5 = vcmask 54312  }
 0x446   : > { %v706_v30 = vmin.f32 %v705_v29, 6.0  ;;  %v713_v35 = vadd.f32 %v712_v32, %v710_v31 }
 0x448   : > { %v707_v33 = vmul.f32 %v706_v30, %v703_v25 }
 0x44a   : > { %v708_v34 = vmul.f32 0.16666667, %v707_v33 }
 0x44c   : > { %v717_v37 = vsel %vm716_vm7, %v708_v34, %v713_v35 }
 0x44d   : > { %1202 = vmatpush3.msk.msra.mxu0 %vm727_vm6, %v717_v37  ;;  %vm1011_vm6 = vcmask 13312  }
 0x44e   : > { %1204 = vmatmul.mubr.msk.f32.vlgmr.msra.gmra.mxu0 %vm723_vm8, %v718_v36 }
 0x50e   : > { %v797_v39 = vpop.f32.mrf.mxu0 }
 0x50f   : > { %v1586_v41 = vadd.f32 %v797_v39, %v721_v38 }
 0x510   : > { %v1205_v42 = vpop.f32.mrf.mxu0 }
 0x511   : > { %v809_v43 = vmul.f32 %v1584_v40, %v1586_v41  ;;  %v1416_v42 = vmov 3  }
 0x512   : > { %1321 = vset.pattern.permute.xlu0 %v1416_v42 }
 0x513   : > { %v811_v44 = vsel %vm810_vm9, %v809_v43, 0.0 }
 0x514   : > { %812 = vadd.xlane.f32.xlu1 %v811_v44 }
 0x59d   : > { %v813_v48 = vpop.xlane.xlu1 %812 }
 0x59e   : > { %v858_v50 = vsel %vm1597_vm14, %v813_v48, 0.0  ;;  %v817_v51 = vsel %vm815_vm15, %v813_v48, 0.0  ;;  %v838_v54 = vsel %vm1602_vm1, %v813_v48, 0.0 }
 0x59f   : > { %v859_v52 = vsel %vm818_vm0, %v858_v50, 0.0  ;;  %v819_v53 = vsel %vm818_vm0, %v817_v51, 0.0  ;;  %v839_v55 = vsel %vm818_vm0, %v838_v54, 0.0 }
 0x5a0   : > { %860 = vadd.xlane.f32.xlu0 %v859_v52  ;;  %820 = vadd.xlane.f32.xlu1 %v819_v53 }
 0x5a4   : > { %840 = vadd.xlane.f32.xlu1 %v839_v55 }
 0x5b6   : > { %951 = vperm.xlu0 %1321, %v1576_v19  }
 0x629   : > { %v861_v56 = vpop.xlane.xlu0 %860  ;;  %v821_v57 = vpop.xlane.xlu1 %820 }
 0x62a   : > { %v862_v58 = vrot.slane %v861_v56, 4  ;;  %v822_v59 = vrot.slane %v821_v57, 4 }
 0x62c   : > { %v863_v60 = vadd.f32 %v862_v58, %v861_v56  ;;  %v823_v61 = vadd.f32 %v822_v59, %v821_v57 }
 0x62d   : > { %v841_v62 = vpop.xlane.xlu1 %840 }
 0x62e   : > { %v864_v63 = vrot.slane %v863_v60, 2  ;;  %v824_v0 = vrot.slane %v823_v61, 2  ;;  %v842_v1 = vrot.slane %v841_v62, 4 }
 0x630   : > { %v843_v2 = vadd.f32 %v842_v1, %v841_v62  ;;  %v825_v3 = vadd.f32 %v824_v0, %v823_v61  ;;  %v865_v4 = vadd.f32 %v864_v63, %v863_v60 }
 0x632   : > { %v844_v5 = vrot.slane %v843_v2, 2  ;;  %v826_v6 = vrot.slane %v825_v3, 1  ;;  %v866_v9 = vrot.slane %v865_v4, 1 }
 0x634   : > { %v827_v7 = vadd.f32 %v826_v6, %v825_v3  ;;  %v845_v8 = vadd.f32 %v844_v5, %v843_v2  ;;  %v867_v12 = vadd.f32 %v866_v9, %v865_v4 }
 0x636   : > { %1207 = vpush %v827_v7  ;;  %v846_v10 = vrot.slane %v845_v8, 1 }
 0x638   : > { %v847_v11 = vadd.f32 %v846_v10, %v845_v8 }
 0x63a   : > { %1209 = vpush %v847_v11  ;;  %v952_v11 = vpop.permute.xlu0 %951 }
 0x63b   : > { %1211 = vpush %v867_v12 }
 0x667   : > { %s1208_s7 = spop %1207 }
 0x668   : > { %s831_s26 = smul.f32 0.0078125, %s1208_s7 }
 0x66a   : > { %v832_v13 = vstv %s831_s26 }
 0x66b   : > { %s1210_s13 = spop %1209  ;;  %v833_v15 = vsel %vm815_vm15, %v832_v13, 0.0 }
 0x66c   : > { %s851_s14 = smul.f32 0.0078125, %s1210_s13  ;;  %s1212_s15 = spop %1211 }
 0x66d   : > { %s871_s16 = smul.f32 0.0078125, %s1212_s15 }
 0x66e   : > { %v852_v14 = vstv %s851_s14 }
 0x66f   : > { %v853_v16 = vsel %vm1602_vm1, %v852_v14, 0.0  ;;  %v872_v17 = vstv %s871_s16 }
 0x670   : > { %v854_v18 = vadd.f32 %v853_v16, %v833_v15  ;;  %v873_v20 = vsel %vm1597_vm14, %v872_v17, 0.0 }
 0x672   : > { %v874_v21 = vadd.f32 %v873_v20, %v854_v18 }
 0x674   : > { %v1622_v22 = vsub.f32 %v1586_v41, %v874_v21  ;;  %v1415_v41 = vmov 2  }
 0x675   : > { %1320 = vset.pattern.permute.xlu1 %v1415_v41 }
 0x676   : > { %v876_v23 = vmul.f32 %v1584_v40, %v1622_v22 }
 0x678   : > { %v877_v24 = vmul.f32 %v876_v23, %v876_v23 }
 0x67a   : > { %v878_v25 = vsel %vm810_vm9, %v877_v24, 0.0 }
 0x67b   : > { %879 = vadd.xlane.f32.xlu1 %v878_v25 }
 0x704   : > { %v880_v26 = vpop.xlane.xlu1 %879 }
 0x705   : > { %v881_v27 = vsel %vm815_vm15, %v880_v26, 0.0  ;;  %v902_v29 = vsel %vm1602_vm1, %v880_v26, 0.0  ;;  %v923_v31 = vsel %vm1597_vm14, %v880_v26, 0.0 }
 0x706   : > { %v882_v28 = vsel %vm818_vm0, %v881_v27, 0.0  ;;  %v903_v30 = vsel %vm818_vm0, %v902_v29, 0.0  ;;  %v924_v32 = vsel %vm818_vm0, %v923_v31, 0.0 }
 0x707   : > { %883 = vadd.xlane.f32.xlu1 %v882_v28 }
 0x70b   : > { %904 = vadd.xlane.f32.xlu1 %v903_v30 }
 0x70f   : > { %925 = vadd.xlane.f32.xlu1 %v924_v32 }
 0x720   : > { %946 = vperm.xlu1 %1320, %v1576_v19  }
 0x790   : > { %v884_v33 = vpop.xlane.xlu1 %883 }
 0x791   : > { %v885_v34 = vrot.slane %v884_v33, 4 }
 0x793   : > { %v886_v35 = vadd.f32 %v885_v34, %v884_v33  ;;  %v1417_v33 = vmov 4  }
 0x794   : > { %v905_v43 = vpop.xlane.xlu1 %904  ;;  %1322 = vset.pattern.permute.xlu0 %v1417_v33 }
 0x795   : > { %v887_v36 = vrot.slane %v886_v35, 2  ;;  %v906_v44 = vrot.slane %v905_v43, 4 }
 0x797   : > { %v888_v37 = vadd.f32 %v887_v36, %v886_v35  ;;  %v907_v45 = vadd.f32 %v906_v44, %v905_v43 }
 0x798   : > { %v926_v55 = vpop.xlane.xlu1 %925 }
 0x799   : > { %v889_v38 = vrot.slane %v888_v37, 1  ;;  %v908_v50 = vrot.slane %v907_v45, 2  ;;  %v927_v56 = vrot.slane %v926_v55, 4 }
 0x79b   : > { %v890_v39 = vadd.f32 %v889_v38, %v888_v37  ;;  %v909_v51 = vadd.f32 %v908_v50, %v907_v45  ;;  %v928_v57 = vadd.f32 %v927_v56, %v926_v55 }
 0x79c   : > { %v947_v10 = vpop.permute.xlu1 %946 }
 0x79d   : > { %1213 = vpush %v890_v39  ;;  %v910_v52 = vrot.slane %v909_v51, 1  ;;  %v929_v59 = vrot.slane %v928_v57, 2 }
 0x79f   : > { %v911_v54 = vadd.f32 %v910_v52, %v909_v51  ;;  %v930_v60 = vadd.f32 %v929_v59, %v928_v57 }
 0x7a1   : > { %v931_v61 = vrot.slane %v930_v60, 1 }
 0x7a3   : > { %v932_v63 = vadd.f32 %v931_v61, %v930_v60 }
 0x7ce   : > { %s1214_s27 = spop %1213 }
 0x7cf   : > { %s894_s30 = smul.f32 0.0078125, %s1214_s27 }
 0x7d1   : > { %s895_s6 = sadd.f32 1e-05, %s894_s30 }
 0x7d3   : > { %v896_v48 = vstv %s895_s6 }
 0x7d4   : > { %1323 = vrsqrt.f32 %v896_v48 }
 0x7e1   : > { %v1324_v53 = vpop.eup %1323 }
 0x7e2   : > { %1215 = vpush %v1324_v53 }
 0x7e3   : > { %1217 = vpush %v911_v54 }
 0x813   : > { %s1216_s8 = spop %1215 }
 0x814   : > { %s1218_s9 = spop %1217  ;;  %v899_v0 = vstv %s1216_s8 }
 0x815   : > { %s915_s10 = smul.f32 0.0078125, %s1218_s9  ;;  %v900_v2 = vsel %vm815_vm15, %v899_v0, 0.0 }
 0x817   : > { %s916_s11 = sadd.f32 1e-05, %s915_s10 }
 0x819   : > { %v917_v58 = vstv %s916_s11 }
 0x81a   : > { %1325 = vrsqrt.f32 %v917_v58 }
 0x827   : > { %v1326_v62 = vpop.eup %1325 }
 0x828   : > { %1219 = vpush %v1326_v62 }
 0x829   : > { %1221 = vpush %v932_v63 }
 0x859   : > { %s1220_s12 = spop %1219 }
 0x85a   : > { %v920_v1 = vstv %s1220_s12  ;;  %s1222_s0 = spop %1221 }
 0x85b   : > { %v921_v3 = vsel %vm1602_vm1, %v920_v1, 0.0  ;;  %s936_s20 = smul.f32 0.0078125, %s1222_s0 }
 0x85c   : > { %v922_v4 = vadd.f32 %v921_v3, %v900_v2 }
 0x85d   : > { %s937_s21 = sadd.f32 1e-05, %s936_s20 }
 0x85f   : > { %v938_v5 = vstv %s937_s21 }
 0x860   : > { %1327 = vrsqrt.f32 %v938_v5 }
 0x86d   : > { %v1328_v6 = vpop.eup %1327 }
 0x86e   : > { %1223 = vpush %v1328_v6 }
 0x89f   : > { %s1224_s18 = spop %1223 }
 0x8a0   : > { %v941_v7 = vstv %s1224_s18 }
 0x8a1   : > { %v942_v8 = vsel %vm1597_vm14, %v941_v7, 0.0 }
 0x8a2   : > { %v943_v9 = vadd.f32 %v942_v8, %v922_v4 }
 0x8a4   : > { %v944_v46 = vmul.f32 %v943_v9, %v1622_v22 }
 0x8a6   : > { %v949_v12 = vmul.f32 %v947_v10, %v944_v46 }
 0x8a8   : > { %v954_v49 = vadd.f32 %v952_v11, %v949_v12 }
 0x8aa   : > { %v955_v13 = vadd.f32 3.0, %v954_v49  ;;  %v960_v14 = vmax.f32 %v954_v49, 0.0  ;;  %v962_v15 = vmin.f32 %v954_v49, 0.0  ;;  %vm965_vm2 = vcmp.ge.f32.partialorder %v954_v49, -3.0 }
 0x8ab   : > { %vm966_vm3 = vcmp.le.f32.partialorder %v954_v49, 3.0 }
 0x8ac   : > { %v956_v16 = vmax.f32 %v955_v13, 0.0  ;;  %v961_v18 = vmin.f32 %v960_v14, 6.0  ;;  %v963_v20 = vmul.f32 0.01, %v962_v15  ;;  %vm967_vm4 = vmand %vm965_vm2, %vm966_vm3 }
 0x8ae   : > { %v957_v17 = vmin.f32 %v956_v16, 6.0  ;;  %v964_v47 = vadd.f32 %v963_v20, %v961_v18 }
 0x8b0   : > { %v958_v21 = vmul.f32 %v957_v17, %v954_v49 }
 0x8b2   : > { %v959_v23 = vmul.f32 0.16666667, %v958_v21 }
 0x8b4   : > { %v968_v24 = vsel %vm967_vm4, %v959_v23, %v964_v47 }
 0x8b5   : > { %v987_v25 = vmul.f32 %v1584_v40, %v968_v24 }
 0x8b7   : > { %v988_v22 = vsel %vm810_vm9, %v987_v25, 0.0 }
 0x8b8   : > { %989 = vadd.xlane.f32.xlu1 %v988_v22 }
 0x941   : > { %v990_v26 = vpop.xlane.xlu1 %989 }
 0x942   : > { %v991_v27 = vmul.f32 0.015625, %v990_v26 }
 0x944   : > { %v992_v28 = vmul.f32 %v991_v27, %v1576_v19 }
 0x946   : > { %v994_v29 = vsel %vm993_vm5, %v992_v28, 0.0 }
 0x947   : > { %v995_v30 = vrot.slane %v994_v29, 4 }
 0x949   : > { %v996_v31 = vadd.f32 %v995_v30, %v994_v29 }
 0x94b   : > { %v997_v32 = vrot.slane %v996_v31, 2 }
 0x94d   : > { %v998_v34 = vadd.f32 %v997_v32, %v996_v31 }
 0x94f   : > { %v999_v35 = vrot.slane %v998_v34, 1 }
 0x951   : > { %v1000_v36 = vadd.f32 %v999_v35, %v998_v34 }
 0x953   : > { %v1001_v37 = vmax.f32 %v1000_v36, 0.0 }
 0x955   : > { %1003 = vrot.lane.b32.xlu1 %v1001_v37, %s1418_s28 }
 0x9c7   : > { %v1004_v40 = vpop.permute.xlu1 %1003 }
 0x9c8   : > { %v1006_v38 = vmul.f32 %v1004_v40, %v1576_v19 }
 0x9ca   : > { %1008 = vrot.lane.b32.xlu0 %v1006_v38, %s1419_s17 }
 0x9ce   : > { %970 = vperm.xlu0 %1322, %v1576_v19  }
 0xa3c   : > { %v1009_v39 = vpop.permute.xlu0 %1008 }
 0xa3d   : > { %v1012_v41 = vsel %vm1011_vm6, %v1009_v39, 0.0 }
 0xa3e   : > { %1013 = vadd.xlane.f32.xlu1 %v1012_v41 }
 0xa49   : > { %v971_v42 = vpop.permute.xlu0 %970 }
 0xa4a   : > { %v973_v43 = vmul.f32 %v971_v42, %v968_v24 }
 0xa4c   : > { %v974_v44 = vsel %vm810_vm9, %v973_v43, 0.0 }
 0xa4d   : > { %v975_v45 = vrot.slane %v974_v44, 4 }
 0xa4f   : > { %v976_v48 = vadd.f32 %v975_v45, %v974_v44 }
 0xa51   : > { %v977_v50 = vrot.slane %v976_v48, 2 }
 0xa53   : > { %v978_v51 = vadd.f32 %v977_v50, %v976_v48 }
 0xa55   : > { %v979_v52 = vrot.slane %v978_v51, 1 }
 0xa57   : > { %v980_v53 = vadd.f32 %v979_v52, %v978_v51 }
 0xa59   : > { %v1195_v54 = vmul.f32 -1.442695, %v980_v53 }
 0xa5b   : > { %1329 = vpow2.f32 %v1195_v54 }
 0xa68   : > { %v1330_v55 = vpop.eup %1329 }
 0xa69   : > { %v984_v56 = vadd.f32 1.0, %v1330_v55 }
 0xa6b   : > { %1331 = vrcp.f32 %v984_v56 }
 0xa78   : > { %v1332_v61 = vpop.eup %1331 }
 0xac7   : > { %v1014_v19 = vpop.xlane.xlu1 %1013 }
 0xac8   : > { %v1015_v57 = vadd.f32 3.0, %v1014_v19 }
 0xaca   : > { %v1016_v58 = vmax.f32 %v1015_v57, 0.0 }
 0xacc   : > { %v1017_v59 = vmin.f32 %v1016_v58, 6.0 }
 0xace   : > { %v1018_v60 = vmul.f32 0.16666667, %v1017_v59 }
 0xad0   : > { %v1019_v62 = vadd.f32 %v1332_v61, %v1018_v60 }
 0xad2   : > { %v1020_v63 = vmul.f32 %v1019_v62, %v968_v24 }
 0xad4   : > { %1021 = vst.msk [vmem:[%s1532_s25] sm:$0x3f] %vm810_vm9, %v1020_v63 }
 0xad5 PF: > { %s15_s24 = sadd.s32 1, %s1387_s24   ;;  %s1689_s7 = sld [smem:[#allocation4_spill]] }
 0xad6   : > { %p12_p1 = scmp.ge.s32.totalorder %s15_s24, 8   ;;  %s1690_s26 = sld [smem:[#allocation5_spill]] }
 0xad7   : > { %s1691_s18 = smov %s1367_s19  ;;  %s1692_s19 = smov %s1499_s29 }
 0xad8   : > { %s1693_s20 = smov %s1379_s22  ;;  %s1694_s21 = smov %s1383_s23 }
 0xad9   :  { %14 = sbr.rel (!%p12_p1) target bundleno = 6 (0x6), region = 150 }
 0xadb   : > { %s1695_s22 = smov %s1689_s7 }
 0xadc   : > { %s1696_s23 = smov %s1690_s26 }

</bundles_post_ra>
